<compile_context>
chip_gen: v6e
topology: v6e:2x2x1
jax: 0.10.0
libtpu: 0.0.40
codegen_flags: <defaults>
</compile_context>

<pallas_src>
import functools

import jax
import jax.numpy as jnp
from jax.experimental import pallas as pl
from jax.experimental.pallas import tpu as pltpu


# ------------------------------ Pallas kernel -------------------------------

def _conv_bn_relu_kernel(x_ref, w_ref, b_ref, o_ref, *,
                         KH, KW, SH, SW, TOH, OW, Cin, Cout, fuse_taps):
    """One grid step = (image n, output-row tile t).

    x_ref : (1, H_p, W_p, Cin)     bf16  full (padded) image, VMEM resident
    w_ref : (KH*KW*Cin, Cout)      bf16  BN-scale-folded weights, im2col order
    b_ref : (1, Cout)              f32   folded BatchNorm bias
    o_ref : (1, TM, Cout)          f32   TM = TOH*OW flattened output pixels
    """
    t = pl.program_id(1)
    row0 = t * (TOH * SH)              # first input row needed by this tile
    TM = TOH * OW

    def tap(ki, kj):
        # Shifted (and, for stride>1, strided) read of the VMEM image tile.
        if SH == 1 and SW == 1:
            return x_ref[0, pl.ds(row0 + ki, TOH), pl.ds(kj, OW), :]
        return x_ref[0, pl.ds(row0 + ki, TOH, stride=SH),
                     pl.ds(kj, OW, stride=SW), :]

    if fuse_taps:
        # One MXU contraction over K = KH*KW*Cin (small-Cin fast path).
        slab = jnp.concatenate(
            [tap(ki, kj) for ki in range(KH) for kj in range(KW)], axis=-1)
        acc = jnp.dot(slab.reshape(TM, KH * KW * Cin), w_ref[...],
                      preferred_element_type=jnp.float32)
    else:
        # Large-Cin path: one dot per tap, contraction already lane-dense.
        acc = jnp.zeros((TM, Cout), jnp.float32)
        for ki in range(KH):
            for kj in range(KW):
                wk = w_ref[pl.ds((ki * KW + kj) * Cin, Cin), :]
                acc = acc + jnp.dot(tap(ki, kj).reshape(TM, Cin), wk,
                                    preferred_element_type=jnp.float32)

    # Epilogue: folded-BN bias + ReLU (scale already folded into the weights).
    out = jnp.maximum(acc + b_ref[...], 0.0)
    o_ref[...] = out.reshape(o_ref.shape).astype(o_ref.dtype)


# ------------------------------- helpers ------------------------------------

def _round_up(x, m):
    return -(-x // m) * m


def _vmem_capacity_bytes():
    try:
        return int(pltpu.get_tpu_info().vmem_capacity_bytes)
    except Exception:
        return 64 * 1024 * 1024          # conservative: v7x has 64 MiB per TC


def _choose_row_tile(OH, OW, max_rows):
    """Pick TOH (output rows per tile). Returns (TOH, OH_padded).

    Multi-tile configurations keep TM = TOH*OW a multiple of 8 (sublane
    alignment of the (1, TM, Cout) output block); a single tile covering the
    whole (padded) OH is always legal (block == full array dim). Awkward OH
    (e.g. prime) is handled by padding OH up instead of degrading to TOH=1.
    """
    def aligned(d, oh):
        return d == oh or (d * OW) % 8 == 0

    best = 1 if aligned(1, OH) else OH
    for d in range(1, OH + 1):
        if OH % d == 0 and d * OW <= max_rows and aligned(d, OH):
            best = d
    if best * OW > max_rows:
        best = OH                                    # single tile fallback

    target = max(1, min(OH, max_rows // max(OW, 1)))
    while target > 1 and (target * OW) % 8:
        target -= 1
    if target > 2 * best:                            # divisor tile is tiny: pad
        return target, _round_up(OH, target)
    return best, OH


# ------------------------------- wrapper ------------------------------------

def conv_block_forward(x_nchw, w_oihw, gamma, beta, running_mean, running_var,
                       *, stride=1, padding=0, eps=1e-5):
    """PyTorch ConvBlock forward (inference): Conv2d(bias=False) -> BN -> ReLU.

    x_nchw: (N, Cin, H, W) f32. Returns (N, Cout, OH, OW) f32 (PyTorch layout).
    """
    SH, SW = (stride, stride) if isinstance(stride, int) else tuple(stride)
    PH, PW = (padding, padding) if isinstance(padding, int) else tuple(padding)
    Cout, Cin, KH, KW = w_oihw.shape
    N, Cin2, H, W = x_nchw.shape
    assert Cin == Cin2

    # Fold BN (running stats) scale into the conv weights; keep bias only.
    scale = gamma.astype(jnp.float32) / jnp.sqrt(running_var.astype(jnp.float32) + eps)
    bias = (beta.astype(jnp.float32) - running_mean.astype(jnp.float32) * scale)
    bias = bias.reshape(1, Cout)
    w_folded = w_oihw.astype(jnp.float32) * scale[:, None, None, None]
    # (Cout, Cin, KH, KW) -> (KH, KW, Cin, Cout) -> (KH*KW*Cin, Cout), bf16.
    wk = jnp.transpose(w_folded, (2, 3, 1, 0)).reshape(KH * KW * Cin, Cout)
    wk = wk.astype(jnp.bfloat16)

    # NCHW -> NHWC (Cout/Cin on lanes), bf16 for the MXU.
    # TODO(synk): keep activations NHWC end-to-end between ConvBlocks so this
    # transpose and the output transpose (extra HBM passes) disappear.
    x = jnp.transpose(x_nchw, (0, 2, 3, 1)).astype(jnp.bfloat16)

    H_p, W_p = H + 2 * PH, W + 2 * PW
    OH = (H_p - KH) // SH + 1
    OW = (W_p - KW) // SW + 1

    # Row-tile choice: cap TM so the f32 accumulator / output tile stay small.
    cout_pad = _round_up(Cout, 128)
    max_rows = max(8, min(512, (4 << 20) // (8 * cout_pad)))
    TOH, OH_pad = _choose_row_tile(OH, OW, max_rows)
    TM = TOH * OW

    # Zero padding (conv padding + extra bottom rows when OH was rounded up).
    H_need = (OH_pad - 1) * SH + KH
    pad_bottom = max(0, H_need - H_p)
    if PH or PW or pad_bottom:
        x = jnp.pad(x, ((0, 0), (PH, PH + pad_bottom), (PW, PW), (0, 0)))
    H_p = H_p + pad_bottom

    fuse_taps = Cin < 128

    # ---- VMEM accounting (v7x: 64 MiB physical / 32 MiB default scoped;
    #      v5e: 16 MiB default scoped; v6e: 32 MiB default scoped). ----------
    img_vmem = H_p * _round_up(W_p, 16) * _round_up(Cin, 128) * 2        # bf16
    w_vmem = _round_up(KH * KW * Cin, 16) * cout_pad * 2                 # bf16
    b_vmem = 8 * cout_pad * 4
    out_vmem = _round_up(TM, 8) * cout_pad * 4
    body_vmem = TM * (_round_up(KH * KW * Cin, 128) * 2 + cout_pad * 4)  # slab+acc
    need = 2 * (img_vmem + w_vmem + b_vmem + out_vmem) + body_vmem + (1 << 20)
    cap = _vmem_capacity_bytes()
    # TODO(synk): if `need` exceeds ~3/4 of VMEM the full-image block is too
    # large; switch to H-tiled input blocks with halo overlap.
    # TODO(synk): single-buffer the per-image input block (pl.Buffered(1)) once
    # buffer_count=1 pipeline mode is confirmed; budgeted as double-buffered.
    cp_kwargs = dict(dimension_semantics=("parallel", "arbitrary"))
    if need > (16 << 20):
        cp_kwargs["vmem_limit_bytes"] = int(min(need + (4 << 20), cap * 3 // 4))

    kernel = functools.partial(
        _conv_bn_relu_kernel, KH=KH, KW=KW, SH=SH, SW=SW,
        TOH=TOH, OW=OW, Cin=Cin, Cout=Cout, fuse_taps=fuse_taps)

    grid = (N, OH_pad // TOH)
    out_flat = pl.pallas_call(
        kernel,
        out_shape=jax.ShapeDtypeStruct((N, OH_pad * OW, Cout), jnp.float32),
        grid_spec=pltpu.PrefetchScalarGridSpec(
            num_scalar_prefetch=0,
            grid=grid,
            in_specs=[
                # Full image per batch element; its block index is constant
                # across the row-tile axis so each image is DMA'd once.
                pl.BlockSpec((1, H_p, W_p, Cin), lambda n, t: (n, 0, 0, 0)),
                pl.BlockSpec((KH * KW * Cin, Cout), lambda n, t: (0, 0)),
                pl.BlockSpec((1, Cout), lambda n, t: (0, 0)),
            ],
            out_specs=pl.BlockSpec((1, TM, Cout), lambda n, t: (n, t, 0)),
        ),
        # t axis "arbitrary" so multi-TensorCore chips (v7x) split the batch
        # axis and never re-DMA the same image from two cores.
        compiler_params=pltpu.CompilerParams(**cp_kwargs),
    )(x, wk, bias)

    out = out_flat.reshape(N, OH_pad, OW, Cout)[:, :OH]
    # Back to PyTorch NCHW layout (see TODO above re: staying NHWC).
    return jnp.transpose(out, (0, 3, 1, 2))


# --------------------------------- demo --------------------------------------

if __name__ == "__main__":
    key = jax.random.PRNGKey(0)
    k_x, k_w, k_g, k_b = jax.random.split(key, 4)

    # ConvBlock(in_channels=4, out_channels=128, k_size=3) at a small size.
    N, Cin, H, W = 2, 4, 16, 16
    Cout, K = 128, 3

    x = jax.random.normal(k_x, (N, Cin, H, W), jnp.float32)
    w = jax.random.normal(k_w, (Cout, Cin, K, K), jnp.float32) * 0.05
    gamma = 1.0 + 0.1 * jax.random.normal(k_g, (Cout,), jnp.float32)
    beta = 0.1 * jax.random.normal(k_b, (Cout,), jnp.float32)
    mean = jnp.zeros((Cout,), jnp.float32)    # BatchNorm running stats (eval)
    var = jnp.ones((Cout,), jnp.float32)

    fwd = jax.jit(functools.partial(conv_block_forward, stride=1, padding=0))
    out = jax.block_until_ready(fwd(x, w, gamma, beta, mean, var))
    OH = OW = H - K + 1
    assert out.shape == (N, Cout, OH, OW), out.shape

    # Reference with the same BN-folded, bf16-quantized weights/inputs.
    s = gamma / jnp.sqrt(var + 1e-5)
    wq = (w * s[:, None, None, None]).astype(jnp.bfloat16).astype(jnp.float32)
    xq = x.astype(jnp.bfloat16).astype(jnp.float32)
    ref = jax.lax.conv_general_dilated(
        jnp.transpose(xq, (0, 2, 3, 1)),
        jnp.transpose(wq, (2, 3, 1, 0)),
        window_strides=(1, 1), padding="VALID",
        dimension_numbers=("NHWC", "HWIO", "NHWC"),
        precision=jax.lax.Precision.HIGHEST)
    ref = jnp.maximum(ref + (beta - mean * s), 0.0)
    ref = jnp.transpose(ref, (0, 3, 1, 2))

    assert bool(jnp.all(jnp.isfinite(out)))
    err = float(jnp.max(jnp.abs(out - ref)))
    assert jnp.allclose(out, ref, rtol=1e-2, atol=1e-2), err
    print("KERNEL_OK")
</pallas_src>

<mosaic_0001>
module attributes {stable_mosaic.version = 11 : i64} {
  func.func @_conv_bn_relu_kernel(%arg0: i32, %arg1: i32, %arg2: memref<1x16x16x4xbf16, #tpu.memory_space<vmem>>, %arg3: memref<36x128xbf16, #tpu.memory_space<vmem>>, %arg4: memref<1x128xf32, #tpu.memory_space<vmem>>, %arg5: memref<1x196x128xf32, #tpu.memory_space<vmem>>) attributes {dimension_semantics = [#tpu.dimension_semantics<parallel>, #tpu.dimension_semantics<arbitrary>], iteration_bounds = array<i64: 2, 1>, scalar_prefetch = 0 : i64, scratch_operands = 0 : i64, tpu.core_type = #tpu.core_type<tc>, window_params = [{transform_indices = @transform_0, window_bounds = array<i64: 1, 16, 16, 4>}, {pipeline_mode = #tpu.pipeline_mode<synchronous>, transform_indices = @transform_1, window_bounds = array<i64: 36, 128>}, {pipeline_mode = #tpu.pipeline_mode<synchronous>, transform_indices = @transform_2, window_bounds = array<i64: 1, 128>}, {transform_indices = @transform_3, window_bounds = array<i64: 1, 196, 128>}]} {
    %c14_i32 = arith.constant 14 : i32
    %0 = arith.muli %arg1, %c14_i32 : i32
    %c0_i32 = arith.constant 0 : i32
    %1 = arith.addi %0, %c0_i32 : i32
    %c0 = arith.constant 0 : index
    %2 = arith.index_cast %1 : i32 to index
    %c0_0 = arith.constant 0 : index
    %c0_1 = arith.constant 0 : index
    %3 = vector.load %arg2[%c0, %2, %c0_0, %c0_1] : memref<1x16x16x4xbf16, #tpu.memory_space<vmem>>, vector<1x14x14x4xbf16>
    %4 = vector.shape_cast %3 : vector<1x14x14x4xbf16> to vector<14x14x4xbf16>
    %c0_i32_2 = arith.constant 0 : i32
    %5 = arith.addi %0, %c0_i32_2 : i32
    %c0_3 = arith.constant 0 : index
    %6 = arith.index_cast %5 : i32 to index
    %c1 = arith.constant 1 : index
    %c0_4 = arith.constant 0 : index
    %7 = vector.load %arg2[%c0_3, %6, %c1, %c0_4] : memref<1x16x16x4xbf16, #tpu.memory_space<vmem>>, vector<1x14x14x4xbf16>
    %8 = vector.shape_cast %7 : vector<1x14x14x4xbf16> to vector<14x14x4xbf16>
    %c0_i32_5 = arith.constant 0 : i32
    %9 = arith.addi %0, %c0_i32_5 : i32
    %c0_6 = arith.constant 0 : index
    %10 = arith.index_cast %9 : i32 to index
    %c2 = arith.constant 2 : index
    %c0_7 = arith.constant 0 : index
    %11 = vector.load %arg2[%c0_6, %10, %c2, %c0_7] : memref<1x16x16x4xbf16, #tpu.memory_space<vmem>>, vector<1x14x14x4xbf16>
    %12 = vector.shape_cast %11 : vector<1x14x14x4xbf16> to vector<14x14x4xbf16>
    %c1_i32 = arith.constant 1 : i32
    %13 = arith.addi %0, %c1_i32 : i32
    %c0_8 = arith.constant 0 : index
    %14 = arith.index_cast %13 : i32 to index
    %c0_9 = arith.constant 0 : index
    %c0_10 = arith.constant 0 : index
    %15 = vector.load %arg2[%c0_8, %14, %c0_9, %c0_10] : memref<1x16x16x4xbf16, #tpu.memory_space<vmem>>, vector<1x14x14x4xbf16>
    %16 = vector.shape_cast %15 : vector<1x14x14x4xbf16> to vector<14x14x4xbf16>
    %c1_i32_11 = arith.constant 1 : i32
    %17 = arith.addi %0, %c1_i32_11 : i32
    %c0_12 = arith.constant 0 : index
    %18 = arith.index_cast %17 : i32 to index
    %c1_13 = arith.constant 1 : index
    %c0_14 = arith.constant 0 : index
    %19 = vector.load %arg2[%c0_12, %18, %c1_13, %c0_14] : memref<1x16x16x4xbf16, #tpu.memory_space<vmem>>, vector<1x14x14x4xbf16>
    %20 = vector.shape_cast %19 : vector<1x14x14x4xbf16> to vector<14x14x4xbf16>
    %c1_i32_15 = arith.constant 1 : i32
    %21 = arith.addi %0, %c1_i32_15 : i32
    %c0_16 = arith.constant 0 : index
    %22 = arith.index_cast %21 : i32 to index
    %c2_17 = arith.constant 2 : index
    %c0_18 = arith.constant 0 : index
    %23 = vector.load %arg2[%c0_16, %22, %c2_17, %c0_18] : memref<1x16x16x4xbf16, #tpu.memory_space<vmem>>, vector<1x14x14x4xbf16>
    %24 = vector.shape_cast %23 : vector<1x14x14x4xbf16> to vector<14x14x4xbf16>
    %c2_i32 = arith.constant 2 : i32
    %25 = arith.addi %0, %c2_i32 : i32
    %c0_19 = arith.constant 0 : index
    %26 = arith.index_cast %25 : i32 to index
    %c0_20 = arith.constant 0 : index
    %c0_21 = arith.constant 0 : index
    %27 = vector.load %arg2[%c0_19, %26, %c0_20, %c0_21] : memref<1x16x16x4xbf16, #tpu.memory_space<vmem>>, vector<1x14x14x4xbf16>
    %28 = vector.shape_cast %27 : vector<1x14x14x4xbf16> to vector<14x14x4xbf16>
    %c2_i32_22 = arith.constant 2 : i32
    %29 = arith.addi %0, %c2_i32_22 : i32
    %c0_23 = arith.constant 0 : index
    %30 = arith.index_cast %29 : i32 to index
    %c1_24 = arith.constant 1 : index
    %c0_25 = arith.constant 0 : index
    %31 = vector.load %arg2[%c0_23, %30, %c1_24, %c0_25] : memref<1x16x16x4xbf16, #tpu.memory_space<vmem>>, vector<1x14x14x4xbf16>
    %32 = vector.shape_cast %31 : vector<1x14x14x4xbf16> to vector<14x14x4xbf16>
    %c2_i32_26 = arith.constant 2 : i32
    %33 = arith.addi %0, %c2_i32_26 : i32
    %c0_27 = arith.constant 0 : index
    %34 = arith.index_cast %33 : i32 to index
    %c2_28 = arith.constant 2 : index
    %c0_29 = arith.constant 0 : index
    %35 = vector.load %arg2[%c0_27, %34, %c2_28, %c0_29] : memref<1x16x16x4xbf16, #tpu.memory_space<vmem>>, vector<1x14x14x4xbf16>
    %36 = vector.shape_cast %35 : vector<1x14x14x4xbf16> to vector<14x14x4xbf16>
    %37 = tpu.concatenate %4, %8, %12, %16, %20, %24, %28, %32, %36 in 2 : vector<14x14x4xbf16>, vector<14x14x4xbf16>, vector<14x14x4xbf16>, vector<14x14x4xbf16>, vector<14x14x4xbf16>, vector<14x14x4xbf16>, vector<14x14x4xbf16>, vector<14x14x4xbf16>, vector<14x14x4xbf16> -> vector<14x14x36xbf16>
    %38 = vector.shape_cast %37 : vector<14x14x36xbf16> to vector<196x36xbf16>
    %c0_30 = arith.constant 0 : index
    %c0_31 = arith.constant 0 : index
    %39 = vector.load %arg3[%c0_30, %c0_31] : memref<36x128xbf16, #tpu.memory_space<vmem>>, vector<36x128xbf16>
    %cst = arith.constant dense<0.000000e+00> : vector<196x128xf32>
    %40 = tpu.matmul %38, %39, %cst {dimension_numbers = #tpu.dot_dimension_numbers<[1], [0], [0], [1], [0, 0, 1, 1], [], []>} : vector<196x36xbf16>, vector<36x128xbf16>, vector<196x128xf32> -> vector<196x128xf32>
    %c0_32 = arith.constant 0 : index
    %c0_33 = arith.constant 0 : index
    %41 = vector.load %arg4[%c0_32, %c0_33] : memref<1x128xf32, #tpu.memory_space<vmem>>, vector<1x128xf32>
    %42 = vector.broadcast %41 : vector<1x128xf32> to vector<196x128xf32>
    %43 = arith.addf %40, %42 : vector<196x128xf32>
    %cst_34 = arith.constant 0.000000e+00 : f32
    %44 = vector.broadcast %cst_34 : f32 to vector<196x128xf32>
    %45 = arith.maximumf %43, %44 : vector<196x128xf32>
    %46 = vector.shape_cast %45 : vector<196x128xf32> to vector<1x196x128xf32>
    %c0_35 = arith.constant 0 : index
    %c0_36 = arith.constant 0 : index
    %c0_37 = arith.constant 0 : index
    %47 = vector.load %arg5[%c0_35, %c0_36, %c0_37] : memref<1x196x128xf32, #tpu.memory_space<vmem>>, vector<1x196x128xf32>
    tpu.vector_store %arg5[%c0_35, %c0_36, %c0_37], %46 {strides = array<i32>} : memref<1x196x128xf32, #tpu.memory_space<vmem>>, vector<1x196x128xf32>,
    return
  }
  func.func @transform_0(%arg0: i32, %arg1: i32) -> (i32, i32, i32, i32) {
    %c0_i32 = arith.constant 0 : i32
    %c0_i32_0 = arith.constant 0 : i32
    %c0_i32_1 = arith.constant 0 : i32
    %c0_i32_2 = arith.constant 0 : i32
    return %arg0, %c0_i32, %c0_i32_0, %c0_i32_1 : i32, i32, i32, i32
  }
  func.func @transform_1(%arg0: i32, %arg1: i32) -> (i32, i32) {
    %c0_i32 = arith.constant 0 : i32
    %c0_i32_0 = arith.constant 0 : i32
    %c0_i32_1 = arith.constant 0 : i32
    return %c0_i32, %c0_i32_0 : i32, i32
  }
  func.func @transform_2(%arg0: i32, %arg1: i32) -> (i32, i32) {
    %c0_i32 = arith.constant 0 : i32
    %c0_i32_0 = arith.constant 0 : i32
    %c0_i32_1 = arith.constant 0 : i32
    return %c0_i32, %c0_i32_0 : i32, i32
  }
  func.func @transform_3(%arg0: i32, %arg1: i32) -> (i32, i32, i32) {
    %c0_i32 = arith.constant 0 : i32
    %c0_i32_0 = arith.constant 0 : i32
    return %arg0, %arg1, %c0_i32 : i32, i32, i32
  }
}

</mosaic_0001>

<bundles_post_ra>
// kernel: conv_block_forward.1
= control target key start
LH: loop header
LB: loop body
LE: loop exit
PB: predicated region body
PF: predicated region fallthrough
CT: control target
= control target key end

     0   :  { %s3863_s12 = smov 0   ;;  %s3865_s13 = smov 0   ;;  %s4934_s0 = inlined_call_operand.vmem [shape: bf16[2,16,16,4], index: 0, kind: input, shape index: {}]   ;;  %s4935_s1 = inlined_call_operand.vmem [shape: bf16[36,128], index: 1, kind: input, shape index: {}]   ;;  %s4936_s2 = inlined_call_operand.vmem [shape: f32[1,128], index: 2, kind: input, shape index: {}]   ;;  %s4937_s3 = inlined_call_operand.vmem [shape: f32[2,196,128], index: 3, kind: output, shape index: {}]  }
   0x1   :  { %s3867_s14 = smov 0  }
   0x2 LB: > { %s25_s15 = sadd.s32 1, %s3826_s13  ;;  %p3284_p0 = scmp.ge.s32.totalorder %s3830_s14, 1  ;;  %s3830_s14 = sphi %s3867_s14, %s13_s14   ;;  %s3826_s13 = sphi %s3865_s13, %s4939_s13   ;;  %s3822_s12 = sphi %s3863_s12, %s4938_s12  }
   0x3   : > { %p27_p1 = scmp.ge.s32.totalorder %s25_s15, 2  ;;  %p151_p2 = scmp.lt.s32.totalorder %s3830_s14, 3 }
   0x5   : > { %s4941_s15 = smov (%p27_p1, %s25_s15), 0  ;;  %p152_p3 = pnand %p3284_p0, %p151_p2 }
   0x6   : > { %p179_p4 = scmp.lt.s32.totalorder (!%p152_p3), %s3822_s12, 1  ;;  %s3832_s20 = smov (!%p152_p3), 12  }
   0x7   : > { %155 = sbr.rel (%p152_p3) target bundleno = 578 (0x242), region = 32  ;;  %s3833_s21 = smov (!%p152_p3), 8  }
   0x8   : > { %s3834_s22 = smov (!%p152_p3), 24   ;;  %s3835_s23 = smov (!%p152_p3), 20  }
   0x9   : > { %s3836_s24 = smov (!%p152_p3), 4   ;;  %s3837_s25 = smov (!%p152_p3), 16  }
   0xa   : > { %s3838_s26 = smov (!%p152_p3), 28   ;;  %s3839_s27 = smov (!%p152_p3), 32  }
   0xc   : > { %s4943_s12 = smov (!%p179_p4, %s3822_s12), 1  ;;  %vm2999_vm0 = vcmask 1041408   ;;  %vm3841_vm1 = vmmov 0   ;;  %vm1397_vm2 = vcmask 31744   ;;  %vm1440_vm3 = vcmask 64512  }
   0xd   : > { %s3552_s16 = sshll.u32 %s4943_s12, 7  ;;  %vm1469_vm4 = vcmask 97280   ;;  %vm1498_vm5 = vcmask 130048   ;;  %vm1527_vm6 = vcmask 162816   ;;  %vm1556_vm7 = vcmask 195584   ;;  %s3633_s7 = smul.u32 200, %s4943_s12 }
   0xe   : > { %s3887_s19 = scalar_lea.vmem %s4934_s0, %s3552_s16  ;;  %vm1585_vm8 = vcmask 228352   ;;  %vm1614_vm9 = vcmask 261120   ;;  %vm2959_vm10 = vcmask 293888  }
   0xf   : > { %v3288_v0 = vld [vmem:[%s3887_s19 + $0x8] sm:$0xf]  ;;  %v3289_v1 = vld [vmem:[%s3887_s19 + $0xc] sm:$0x7]  ;;  %v227_v5 = vld [vmem:[%s3887_s19 + $0x4] sm:$0xf]  ;;  %s4874_s16 = scalar_lea.vmem %s4937_s3, %s3633_s7 }
  0x10   : > { %v3316_v2 = vld [vmem:[%s3887_s19 + $0xc] sm:$0xf]  ;;  %v3442_v3 = vcombine.low %v3288_v0, %v3289_v1  ;;  %v241_v6 = vld [vmem:[%s3887_s19] sm:$0xe]  ;;  %v3344_v10 = vld [vmem:[%s3887_s19 + $0x10] sm:$0xf] }
  0x11   : > { %v3456_v4 = vcombine.low %v3288_v0, %v3316_v2  ;;  %v3895_v7 = vld [vmem:[%s3887_s19] sm:$0xf]  ;;  %v3428_v8 = vcombine.low %v241_v6, %v227_v5  ;;  %v3345_v11 = vld [vmem:[%s3887_s19 + $0x14] sm:$0x7]  ;;  %v228_v15 = vld [vmem:[%s3887_s19 + $0xc] sm:$0xf] }
  0x12   : > { %v3414_v9 = vcombine.low %v3895_v7, %v227_v5  ;;  %767 = vrot.lane.b32.xlu1 %v3442_v3, %s3832_s20  ;;  %v3372_v13 = vld [vmem:[%s3887_s19 + $0x14] sm:$0xf]  ;;  %v3484_v14 = vcombine.low %v3344_v10, %v3345_v11  ;;  %v242_v19 = vld [vmem:[%s3887_s19 + $0x8] sm:$0xe]  ;;  %v3290_v28 = vld [vmem:[%s3887_s19 + $0x10] sm:$0xf] }
  0x13   : > { %v840_v12 = vshll.u32 %v3456_v4, 16  ;;  %v655_v16 = vrot.slane %v3428_v8, 1  ;;  %v3498_v18 = vcombine.low %v3344_v10, %v3372_v13  ;;  %v3905_v20 = vld [vmem:[%s3887_s19 + $0x8] sm:$0xf]  ;;  %v3429_v21 = vcombine.low %v242_v19, %v228_v15  ;;  %v3317_v33 = vld [vmem:[%s3887_s19 + $0x14] sm:$0xf] }
  0x14   : > { %v490_v17 = vshll.u32 %v3414_v9, 16  ;;  %v3415_v22 = vcombine.low %v3905_v20, %v228_v15  ;;  %v3330_v23 = vld [vmem:[%s3887_s19 + $0x8] sm:$0xe]  ;;  %v838_v24 = vshrl.u32 %v3456_v4, 16  ;;  %v488_v26 = vshrl.u32 %v3414_v9, 16 }
  0x15   : > { %669 = vrot.lane.b32.xlu0 %v655_v16, %s3833_s21  ;;  %v3470_v25 = vcombine.low %v3330_v23, %v3316_v2  ;;  %v656_v29 = vrot.slane %v3429_v21, 1  ;;  %v842_v30 = vrot.slane %v840_v12, 1  ;;  %v1190_v32 = vshll.u32 %v3498_v18, 16  ;;  %v3386_v42 = vld [vmem:[%s3887_s19 + $0x10] sm:$0xe] }
  0x16   : > { %v492_v27 = vrot.slane %v490_v17, 1  ;;  %1117 = vrot.lane.b32.xlu1 %v3484_v14, %s3834_s22  ;;  %v497_v31 = vshll.u32 %v3415_v22, 16  ;;  %v495_v36 = vshrl.u32 %v3415_v22, 16  ;;  %v3457_v38 = vcombine.low %v3290_v28, %v3317_v33  ;;  %v3346_v43 = vld [vmem:[%s3887_s19 + $0x18] sm:$0xf] }
  0x17   : > { %v1005_v34 = vrot.slane %v3470_v25, 1  ;;  %v843_v39 = vor.u32 %v842_v30, %v838_v24  ;;  %v1188_v40 = vshrl.u32 %v3498_v18, 16  ;;  %v1192_v41 = vrot.slane %v1190_v32, 1  ;;  %v3918_v44 = vld [vmem:[%s3887_s19 + $0x1c] sm:$0xf] }
  0x18   : > { %v493_v35 = vor.u32 %v492_v27, %v488_v26  ;;  %v499_v37 = vrot.slane %v497_v31, 1  ;;  %v847_v46 = vshll.u32 %v3457_v38, 16  ;;  %v3291_v48 = vld [vmem:[%s3887_s19 + $0x14] sm:$0x7]  ;;  %v3512_v49 = vcombine.low %v3386_v42, %v3372_v13  ;;  %v3925_v51 = vld [vmem:[%s3887_s19 + $0x10] sm:$0xf] }
  0x19   : > { %671 = vrot.lane.b32.xlu0 %v656_v29, %s3833_s21  ;;  %v1193_v47 = vor.u32 %v1192_v41, %v1188_v40  ;;  %v3499_v50 = vcombine.low %v3346_v43, %v3918_v44  ;;  %v229_v52 = vld [vmem:[%s3887_s19 + $0x14] sm:$0xf]  ;;  %v3443_v53 = vcombine.low %v3290_v28, %v3291_v48  ;;  %v845_v54 = vshrl.u32 %v3457_v38, 16  ;;  %v3331_v56 = vld [vmem:[%s3887_s19 + $0x10] sm:$0xe] }
  0x1a   : > { %1019 = vrot.lane.b32.xlu1 %v1005_v34, %s3835_s23  ;;  %v500_v45 = vor.u32 %v499_v37, %v495_v36  ;;  %v849_v55 = vrot.slane %v847_v46, 1  ;;  %v3416_v57 = vcombine.low %v3925_v51, %v229_v52  ;;  %v1355_v58 = vrot.slane %v3512_v49, 1  ;;  %v215_v60 = vld [vmem:[%s3887_s19 + $0x40] sm:$0xf]  ;;  %v235_v61 = vld [vmem:[%s3887_s19 + $0x44] sm:$0xf] }
  0x1b   : > { %v1197_v59 = vshll.u32 %v3499_v50, 16  ;;  %v3347_v62 = vld [vmem:[%s3887_s19 + $0x1c] sm:$0x7]  ;;  %v3471_v0 = vcombine.low %v3331_v56, %v3317_v33  ;;  %v3422_v2 = vcombine.low %v215_v60, %v235_v61  ;;  %v1195_v4 = vshrl.u32 %v3499_v50, 16  ;;  %v243_v6 = vld [vmem:[%s3887_s19 + $0x10] sm:$0xe] }
  0x1c   : > { %v850_v63 = vor.u32 %v849_v55, %v845_v54  ;;  %v504_v1 = vshll.u32 %v3416_v57, 16  ;;  %v3485_v3 = vcombine.low %v3346_v43, %v3347_v62  ;;  %v502_v9 = vshrl.u32 %v3416_v57, 16  ;;  %v249_v14 = vld [vmem:[%s3887_s19 + $0x40] sm:$0xe]  ;;  %v3304_v15 = vld [vmem:[%s3887_s19 + $0x48] sm:$0xf] }
  0x1d   : > { %585 = vrot.lane.b32.xlu0 %v493_v35, %s3836_s24  ;;  %v1199_v5 = vrot.slane %v1197_v59, 1  ;;  %v1006_v8 = vrot.slane %v3471_v0, 1  ;;  %v546_v11 = vshll.u32 %v3422_v2, 16  ;;  %v3430_v13 = vcombine.low %v243_v6, %v229_v52  ;;  %v3324_v16 = vld [vmem:[%s3887_s19 + $0x4c] sm:$0xf] }
  0x1e   : > { %935 = vrot.lane.b32.xlu1 %v843_v39, %s3837_s25  ;;  %v506_v10 = vrot.slane %v504_v1, 1  ;;  %v544_v18 = vshrl.u32 %v3422_v2, 16  ;;  %v3387_v21 = vld [vmem:[%s3887_s19 + $0x18] sm:$0xe]  ;;  %v3436_v23 = vcombine.low %v249_v14, %v235_v61  ;;  %v3464_v24 = vcombine.low %v3304_v15, %v3324_v16  ;;  %v3318_v26 = vld [vmem:[%s3887_s19 + $0x1c] sm:$0xf] }
  0x1f   : > { %v1200_v12 = vor.u32 %v1199_v5, %v1195_v4  ;;  %v548_v19 = vrot.slane %v546_v11, 1  ;;  %v657_v22 = vrot.slane %v3430_v13, 1  ;;  %v3292_v25 = vld [vmem:[%s3887_s19 + $0x18] sm:$0xf]  ;;  %v217_v27 = vld [vmem:[%s3887_s19 + $0x48] sm:$0xf]  ;;  %v3513_v30 = vcombine.low %v3387_v21, %v3918_v44 }
  0x20   : > { %v507_v17 = vor.u32 %v506_v10, %v502_v9  ;;  %v3950_v28 = vld [vmem:[%s3887_s19 + $0x4c] sm:$0xf]  ;;  %v3458_v31 = vcombine.low %v3292_v25, %v3318_v26  ;;  %v663_v32 = vrot.slane %v3436_v23, 1  ;;  %v896_v33 = vshll.u32 %v3464_v24, 16  ;;  %v3293_v39 = vld [vmem:[%s3887_s19 + $0x1c] sm:$0x7] }
  0x21   : > { %587 = vrot.lane.b32.xlu0 %v500_v45, %s3836_s24  ;;  %v549_v29 = vor.u32 %v548_v19, %v544_v18  ;;  %v3423_v34 = vcombine.low %v217_v27, %v3950_v28  ;;  %v3305_v35 = vld [vmem:[%s3887_s19 + $0x4c] sm:$0x7]  ;;  %v1356_v36 = vrot.slane %v3513_v30, 1  ;;  %v894_v40 = vshrl.u32 %v3464_v24, 16  ;;  %v3332_v49 = vld [vmem:[%s3887_s19 + $0x18] sm:$0xe] }
  0x22   : > { %1285 = vrot.lane.b32.xlu1 %v1193_v47, %s3838_s26  ;;  %v854_v37 = vshll.u32 %v3458_v31, 16  ;;  %v3450_v38 = vcombine.low %v3304_v15, %v3305_v35  ;;  %v898_v41 = vrot.slane %v896_v33, 1  ;;  %v3444_v43 = vcombine.low %v3292_v25, %v3293_v39  ;;  %v3374_v54 = vld [vmem:[%s3887_s19 + $0x24] sm:$0xf]  ;;  %v3338_v55 = vld [vmem:[%s3887_s19 + $0x48] sm:$0xe] }
  0x23   : > { %v553_v42 = vshll.u32 %v3423_v34, 16  ;;  %v852_v44 = vshrl.u32 %v3458_v31, 16  ;;  %v551_v47 = vshrl.u32 %v3423_v34, 16  ;;  %v3472_v52 = vcombine.low %v3332_v49, %v3318_v26  ;;  %v3348_v56 = vld [vmem:[%s3887_s19 + $0x20] sm:$0xf] }
  0x24   : > { %v856_v45 = vrot.slane %v854_v37, 1  ;;  %v899_v46 = vor.u32 %v898_v41, %v894_v40  ;;  %v3349_v57 = vld [vmem:[%s3887_s19 + $0x24] sm:$0x7]  ;;  %v3500_v59 = vcombine.low %v3348_v56, %v3374_v54  ;;  %v3478_v60 = vcombine.low %v3338_v55, %v3324_v16  ;;  %v3972_v62 = vld [vmem:[%s3887_s19 + $0x54] sm:$0xf]  ;;  %v3757_v40 = vld [vmem:[%s4935_s1 + $0x8] sm:$0xff]  }
  0x25   : > { %769 = vrot.lane.b32.xlu0 %v3443_v53, %s3832_s20  ;;  %v555_v48 = vrot.slane %v553_v42, 1  ;;  %v3486_v61 = vcombine.low %v3348_v56, %v3349_v57  ;;  %v3360_v0 = vld [vmem:[%s3887_s19 + $0x50] sm:$0xf]  ;;  %v3361_v1 = vld [vmem:[%s3887_s19 + $0x54] sm:$0x7]  ;;  %v3760_v49 = vld [vmem:[%s4935_s1] sm:$0xff]  }
  0x26   : > { %1369 = vrot.lane.b32.xlu1 %v1355_v58, %s3839_s27  ;;  %v857_v50 = vor.u32 %v856_v45, %v852_v44  ;;  %v1007_v58 = vrot.slane %v3472_v52, 1  ;;  %v3978_v2 = vld [vmem:[%s3887_s19 + $0x54] sm:$0xf]  ;;  %v3506_v4 = vcombine.low %v3360_v0, %v3972_v62  ;;  %v3306_v6 = vld [vmem:[%s3887_s19 + $0x50] sm:$0xf]  ;;  %v3492_v9 = vcombine.low %v3360_v0, %v3361_v1 }
  0x27   : > { %v556_v53 = vor.u32 %v555_v48, %v551_v47  ;;  %v3465_v10 = vcombine.low %v3306_v6, %v3978_v2  ;;  %v205_v11 = vld [vmem:[%s3887_s19 + $0x18] sm:$0xf]  ;;  %v3307_v13 = vld [vmem:[%s3887_s19 + $0x54] sm:$0x7]  ;;  %v3388_v14 = vld [vmem:[%s3887_s19 + $0x20] sm:$0xe] }
  0x28   : > { %v1202_v15 = vshrl.u32 %v3500_v59, 16  ;;  %v1246_v18 = vshll.u32 %v3506_v4, 16  ;;  %v3451_v21 = vcombine.low %v3306_v6, %v3307_v13  ;;  %v1244_v25 = vshrl.u32 %v3506_v4, 16  ;;  %v244_v33 = vld [vmem:[%s3887_s19 + $0x18] sm:$0xe] }
  0x29   : > { %937 = vrot.lane.b32.xlu0 %v850_v63, %s3837_s25  ;;  %v250_v63 = vld [vmem:[%s3887_s19 + $0x48] sm:$0xe]  ;;  %v903_v23 = vshll.u32 %v3465_v10, 16  ;;  %v901_v31 = vshrl.u32 %v3465_v10, 16  ;;  %v219_v34 = vld [vmem:[%s3887_s19 + $0x50] sm:$0xf] }
  0x2a   : > { %1119 = vrot.lane.b32.xlu1 %v3485_v3, %s3834_s22  ;;  %v1013_v3 = vrot.slane %v3478_v60, 1  ;;  %v3437_v5 = vcombine.low %v250_v63, %v3950_v28  ;;  %v1248_v26 = vrot.slane %v1246_v18, 1  ;;  %v3840_v28 = vmov 0.0   ;;  %v4002_v35 = vld [vmem:[%s3887_s19 + $0x54] sm:$0xf] }
  0x2b   : > { %3569 = vmatprep.subr.bf16.mxu0 %v3840_v28  ;;  %3627 = vmatprep.subr.bf16.mxu1 %v3840_v28  ;;  %v3424_v44 = vcombine.low %v219_v34, %v4002_v35  ;;  %v3362_v45 = vld [vmem:[%s3887_s19 + $0x58] sm:$0xf]  ;;  %v3319_v52 = vld [vmem:[%s3887_s19 + $0x24] sm:$0xf]  ;;  %v3294_v56 = vld [vmem:[%s3887_s19 + $0x20] sm:$0xf] }
  0x2c   : > { %v664_v16 = vrot.slane %v3437_v5, 1  ;;  %v1249_v37 = vor.u32 %v1248_v26, %v1244_v25  ;;  %3575 = vmatprep.mubr.msk.bf16.mxu0 %vm3841_vm1, %v3840_v28  ;;  %v3295_v57 = vld [vmem:[%s3887_s19 + $0x24] sm:$0x7]  ;;  %3603 = vmatprep.mubr.msk.bf16.mxu1 %vm3841_vm1, %v3840_v28  ;;  %v3326_v10 = vld [vmem:[%s3887_s19 + $0x5c] sm:$0xf] }
  0x2d   : > { %1021 = vrot.lane.b32.xlu0 %v1006_v8, %s3835_s23  ;;  %v1204_v8 = vshll.u32 %v3500_v59, 16  ;;  %v3459_v59 = vcombine.low %v3294_v56, %v3319_v52  ;;  %v3375_v25 = vld [vmem:[%s3887_s19 + $0x2c] sm:$0xf]  ;;  %v3309_v26 = vld [vmem:[%s3887_s19 + $0x5c] sm:$0x7] }
  0x2e   : > { %1287 = vrot.lane.b32.xlu1 %v1200_v12, %s3838_s26  ;;  %v230_v12 = vld [vmem:[%s3887_s19 + $0x1c] sm:$0xf] }
  0x2f   : > { %v3417_v19 = vcombine.low %v205_v11, %v230_v12  ;;  %v3431_v42 = vcombine.low %v244_v33, %v230_v12  ;;  %v859_v12 = vshrl.u32 %v3459_v59, 16 }
  0x31   : > { %589 = vrot.lane.b32.xlu0 %v507_v17, %s3836_s24  ;;  %v1206_v17 = vrot.slane %v1204_v8, 1  ;;  %v511_v27 = vshll.u32 %v3417_v19, 16  ;;  %v3333_v8 = vld [vmem:[%s3887_s19 + $0x20] sm:$0xe] }
  0x32   : > { %673 = vrot.lane.b32.xlu1 %v657_v22, %s3833_s21  ;;  %v3514_v22 = vcombine.low %v3388_v14, %v3374_v54  ;;  %v560_v54 = vshll.u32 %v3424_v44, 16 }
  0x33   : > { %v1207_v24 = vor.u32 %v1206_v17, %v1202_v15  ;;  %v513_v39 = vrot.slane %v511_v27, 1  ;;  %v3473_v15 = vcombine.low %v3333_v8, %v3319_v52  ;;  %v207_v27 = vld [vmem:[%s3887_s19 + $0x20] sm:$0xf] }
  0x34   : > { %v1357_v30 = vrot.slane %v3514_v22, 1  ;;  %v562_v63 = vrot.slane %v560_v54, 1  ;;  %v245_v54 = vld [vmem:[%s3887_s19 + $0x20] sm:$0xe] }
  0x35   : > { %601 = vrot.lane.b32.xlu0 %v549_v29, %s3836_s24  ;;  %v3752_v29 = vld [vmem:[%s4935_s1 + $0x10] ss:$0 sps:$4 sm:$0x33]   ;;  %v1008_v22 = vrot.slane %v3473_v15, 1  ;;  %v3396_v15 = vld [vmem:[%s3887_s19 + $0x60] sm:$0xe] }
  0x36   : > { %685 = vrot.lane.b32.xlu1 %v663_v32, %s3833_s21  ;;  %v905_v32 = vrot.slane %v903_v23, 1 }
  0x38   : > { %v906_v41 = vor.u32 %v905_v32, %v901_v31 }
  0x39   : > { %1371 = vrot.lane.b32.xlu0 %v1356_v36, %s3839_s27  ;;  %v3001_v36 = vsel %vm2999_vm0, %v3752_v29, 0  ;;  %v231_v29 = vld [vmem:[%s3887_s19 + $0x24] sm:$0xf] }
  0x3a   : > { %783 = vrot.lane.b32.xlu1 %v3450_v38, %s3832_s20  ;;  %v509_v38 = vshrl.u32 %v3417_v19, 16  ;;  %3570 = vmatpush3.bf16.msra.mxu0 %v3001_v36 }
  0x3b   : > { %3571 = vmatprep.subr.bf16.mxu0 %v3840_v28  ;;  %3630 = vmatpush3.bf16.msra.mxu1 %v3001_v36  ;;  %v3418_v36 = vcombine.low %v207_v27, %v231_v29  ;;  %v4093_v27 = vld [vmem:[%s3887_s19 + $0x34] sm:$0xf] }
  0x3c   : > { %3628 = vmatprep.subr.bf16.mxu1 %v3840_v28  ;;  %v514_v47 = vor.u32 %v513_v39, %v509_v38 }
  0x3d   : > { %771 = vrot.lane.b32.xlu0 %v3444_v43, %s3832_s20  ;;  %v3394_v43 = vld [vmem:[%s3887_s19 + $0x50] sm:$0xe] }
  0x3e   : > { %951 = vrot.lane.b32.xlu1 %v899_v46, %s3837_s25  ;;  %v4014_v46 = vld [vmem:[%s3887_s19 + $0x5c] sm:$0xf]  ;;  %v3520_v48 = vcombine.low %v3394_v43, %v3972_v62  ;;  %3572 = vmatpush3.bf16.msra.mxu0 %v3757_v40  ;;  %v558_v62 = vshrl.u32 %v3424_v44, 16  ;;  %v518_v43 = vshll.u32 %v3418_v36, 16 }
  0x3f   : > { %v3507_v55 = vcombine.low %v3362_v45, %v4014_v46  ;;  %3573 = vmatprep.subr.bf16.mxu0 %v3840_v28  ;;  %3631 = vmatpush3.bf16.msra.mxu1 %v3757_v40 }
  0x40   : > { %3629 = vmatprep.subr.bf16.mxu1 %v3840_v28  ;;  %v563_v4 = vor.u32 %v562_v63, %v558_v62  ;;  %v520_v52 = vrot.slane %v518_v43, 1 }
  0x41   : > { %939 = vrot.lane.b32.xlu0 %v857_v50, %s3837_s25  ;;  %v658_v50 = vrot.slane %v3431_v42, 1  ;;  %v1253_v0 = vshll.u32 %v3507_v55, 16  ;;  %v1251_v5 = vshrl.u32 %v3507_v55, 16  ;;  %v221_v55 = vld [vmem:[%s3887_s19 + $0x58] sm:$0xf] }
  0x42   : > { %603 = vrot.lane.b32.xlu1 %v556_v53, %s3836_s24  ;;  %v3339_v53 = vld [vmem:[%s3887_s19 + $0x50] sm:$0xe]  ;;  %3574 = vmatpush3.bf16.msra.mxu0 %v3760_v49 }
  0x43   : > { %v3479_v60 = vcombine.low %v3339_v53, %v3978_v2  ;;  %3632 = vmatpush3.bf16.msra.mxu1 %v3760_v49  ;;  %v3363_v2 = vld [vmem:[%s3887_s19 + $0x5c] sm:$0x7]  ;;  %v1255_v6 = vrot.slane %v1253_v0, 1  ;;  %v3382_v53 = vld [vmem:[%s3887_s19 + $0x64] sm:$0xf] }
  0x44   : > { %v3493_v11 = vcombine.low %v3362_v45, %v3363_v2 }
  0x45   : > { %1023 = vrot.lane.b32.xlu0 %v1007_v58, %s3835_s23  ;;  %v1363_v58 = vrot.slane %v3520_v48, 1  ;;  %v1014_v1 = vrot.slane %v3479_v60, 1  ;;  %v1256_v14 = vor.u32 %v1255_v6, %v1251_v5  ;;  %v3364_v48 = vld [vmem:[%s3887_s19 + $0x60] sm:$0xf]  ;;  %v3296_v5 = vld [vmem:[%s3887_s19 + $0x28] sm:$0xf] }
  0x46   : > { %1121 = vrot.lane.b32.xlu1 %v3486_v61, %s3834_s22  ;;  %v3445_v61 = vcombine.low %v3294_v56, %v3295_v57  ;;  %v238_v56 = vld [vmem:[%s3887_s19 + $0x5c] sm:$0xf]  ;;  %v3297_v6 = vld [vmem:[%s3887_s19 + $0x2c] sm:$0x7] }
  0x47   : > { %v3425_v62 = vcombine.low %v221_v55, %v238_v56  ;;  %v3353_v55 = vld [vmem:[%s3887_s19 + $0x34] sm:$0x7] }
  0x49   : > { %1035 = vrot.lane.b32.xlu0 %v1013_v3, %s3835_s23  ;;  %v861_v3 = vshll.u32 %v3459_v59, 16  ;;  %v3508_v59 = vcombine.low %v3364_v48, %v3382_v53  ;;  %v567_v2 = vshll.u32 %v3425_v62, 16 }
  0x4a   : > { %1133 = vrot.lane.b32.xlu1 %v3492_v9, %s3834_s22  ;;  %v3308_v9 = vld [vmem:[%s3887_s19 + $0x58] sm:$0xf] }
  0x4b   : > { %v863_v13 = vrot.slane %v861_v3, 1  ;;  %v3466_v17 = vcombine.low %v3308_v9, %v3326_v10  ;;  %v3452_v33 = vcombine.low %v3308_v9, %v3309_v26  ;;  %v1260_v0 = vshll.u32 %v3508_v59, 16  ;;  %v3365_v3 = vld [vmem:[%s3887_s19 + $0x64] sm:$0x7]  ;;  %v4090_v26 = vld [vmem:[%s3887_s19 + $0x30] sm:$0xf] }
  0x4c   : > { %v3494_v8 = vcombine.low %v3364_v48, %v3365_v3 }
  0x4d   : > { %687 = vrot.lane.b32.xlu0 %v664_v16, %s3833_s21  ;;  %v251_v16 = vld [vmem:[%s3887_s19 + $0x50] sm:$0xe]  ;;  %v864_v18 = vor.u32 %v863_v13, %v859_v12  ;;  %v910_v23 = vshll.u32 %v3466_v17, 16  ;;  %v908_v34 = vshrl.u32 %v3466_v17, 16  ;;  %v3446_v12 = vcombine.low %v3296_v5, %v3297_v6  ;;  %v209_v17 = vld [vmem:[%s3887_s19 + $0x28] sm:$0xf] }
  0x4e   : > { %785 = vrot.lane.b32.xlu1 %v3451_v21, %s3832_s20  ;;  %v3438_v19 = vcombine.low %v251_v16, %v4002_v35  ;;  %v3395_v21 = vld [vmem:[%s3887_s19 + $0x58] sm:$0xe]  ;;  %v565_v13 = vshrl.u32 %v3425_v62, 16  ;;  %v4119_v62 = vld [vmem:[%s3887_s19 + $0x30] sm:$0xf] }
  0x4f   : > { %v3521_v31 = vcombine.low %v3395_v21, %v4014_v46  ;;  %v912_v35 = vrot.slane %v910_v23, 1  ;;  %v252_v16 = vld [vmem:[%s3887_s19 + $0x58] sm:$0xe]  ;;  %v3522_v21 = vcombine.low %v3396_v15, %v3382_v53 }
  0x51   : > { %1289 = vrot.lane.b32.xlu0 %v1207_v24, %s3838_s26  ;;  %v3350_v24 = vld [vmem:[%s3887_s19 + $0x28] sm:$0xf]  ;;  %v1364_v38 = vrot.slane %v3521_v31, 1  ;;  %v913_v40 = vor.u32 %v912_v35, %v908_v34  ;;  %v4098_v34 = vld [vmem:[%s3887_s19 + $0x64] sm:$0xf] }
  0x52   : > { %1373 = vrot.lane.b32.xlu1 %v1357_v30, %s3839_s27  ;;  %v665_v30 = vrot.slane %v3438_v19, 1  ;;  %v3501_v32 = vcombine.low %v3350_v24, %v3375_v25  ;;  %v3334_v35 = vld [vmem:[%s3887_s19 + $0x28] sm:$0xe] }
  0x54   : > { %v1211_v39 = vshll.u32 %v3501_v32, 16  ;;  %v1209_v45 = vshrl.u32 %v3501_v32, 16 }
  0x55   : > { %1301 = vrot.lane.b32.xlu0 %v1249_v37, %s3838_s26  ;;  %v3340_v37 = vld [vmem:[%s3887_s19 + $0x58] sm:$0xe] }
  0x56   : > { %953 = vrot.lane.b32.xlu1 %v906_v41, %s3837_s25  ;;  %v3351_v41 = vld [vmem:[%s3887_s19 + $0x2c] sm:$0x7]  ;;  %v3480_v42 = vcombine.low %v3340_v37, %v3326_v10  ;;  %v1213_v46 = vrot.slane %v1211_v39, 1  ;;  %v1258_v10 = vshrl.u32 %v3508_v59, 16  ;;  %v3502_v37 = vcombine.low %v4090_v26, %v4093_v27  ;;  %v3310_v39 = vld [vmem:[%s3887_s19 + $0x60] sm:$0xf] }
  0x57   : > { %v3487_v44 = vcombine.low %v3350_v24, %v3351_v41  ;;  %v3439_v24 = vcombine.low %v252_v16, %v238_v56  ;;  %v1661_v16 = vlaneseq }
  0x58   : > { %v1015_v49 = vrot.slane %v3480_v42, 1  ;;  %v1214_v57 = vor.u32 %v1213_v46, %v1209_v45  ;;  %v200_v42 = vld [vmem:[%s3887_s19 + $0x4] sm:$0x7] }
  0x59   : > { %591 = vrot.lane.b32.xlu0 %v514_v47, %s3836_s24  ;;  %v3389_v47 = vld [vmem:[%s3887_s19 + $0x28] sm:$0xe] }
  0x5a   : > { %675 = vrot.lane.b32.xlu1 %v658_v50, %s3833_s21  ;;  %v516_v50 = vshrl.u32 %v3418_v36, 16 }
  0x5c   : > { %v521_v60 = vor.u32 %v520_v52, %v516_v50  ;;  %v3400_v52 = vcombine.low %v3895_v7, %v200_v42  ;;  %v4122_v7 = vld [vmem:[%s3887_s19 + $0x34] sm:$0xf] }
  0x5d   : > { %1385 = vrot.lane.b32.xlu0 %v1363_v58, %s3839_s27  ;;  %v3515_v58 = vcombine.low %v3389_v47, %v3375_v25 }
  0x5e   : > { %773 = vrot.lane.b32.xlu1 %v3445_v61, %s3832_s20  ;;  %v3432_v61 = vcombine.low %v245_v54, %v231_v29 }
  0x5f   : > { %v1358_v63 = vrot.slane %v3515_v58, 1  ;;  %v1216_v58 = vshrl.u32 %v3502_v37, 16 }
  0x61   : > { %1037 = vrot.lane.b32.xlu0 %v1014_v1, %s3835_s23  ;;  %v659_v1 = vrot.slane %v3432_v61, 1  ;;  %v3341_v61 = vld [vmem:[%s3887_s19 + $0x60] sm:$0xe] }
  0x62   : > { %605 = vrot.lane.b32.xlu1 %v563_v4, %s3836_s24  ;;  %v3320_v4 = vld [vmem:[%s3887_s19 + $0x2c] sm:$0xf] }
  0x63   : > { %v3460_v9 = vcombine.low %v3296_v5, %v3320_v4  ;;  %v3474_v45 = vcombine.low %v3334_v35, %v3320_v4 }
  0x65   : > { %1135 = vrot.lane.b32.xlu0 %v3493_v11, %s3834_s22  ;;  %v1262_v11 = vrot.slane %v1260_v0, 1  ;;  %v866_v31 = vshrl.u32 %v3460_v9, 16  ;;  %v1009_v54 = vrot.slane %v3474_v45, 1 }
  0x66   : > { %1303 = vrot.lane.b32.xlu1 %v1256_v14, %s3838_s26  ;;  %v569_v14 = vrot.slane %v567_v2, 1 }
  0x67   : > { %v1263_v19 = vor.u32 %v1262_v11, %v1258_v10  ;;  %v3461_v10 = vcombine.low %v4119_v62, %v4122_v7 }
  0x68   : > { %v570_v23 = vor.u32 %v569_v14, %v565_v13  ;;  %v3842_v14 = vmov 1966171168  }
  0x69   : > { %941 = vrot.lane.b32.xlu0 %v864_v18, %s3837_s25  ;;  %v4084_v18 = vld [vmem:[%s3887_s19 + $0x2c] sm:$0xf]  ;;  %v1659_v15 = vunpack.c.l.s4 %v3842_v14  ;;  %v873_v42 = vshrl.u32 %v3461_v10, 16 }
  0x6a   : > { %1025 = vrot.lane.b32.xlu1 %v1008_v22, %s3835_s23  ;;  %v868_v22 = vshll.u32 %v3460_v9, 16  ;;  %v3419_v25 = vcombine.low %v209_v17, %v4084_v18  ;;  %v246_v9 = vld [vmem:[%s3887_s19 + $0x28] sm:$0xe] }
  0x6c   : > { %v870_v32 = vrot.slane %v868_v22, 1  ;;  %v525_v36 = vshll.u32 %v3419_v25, 16  ;;  %v523_v47 = vshrl.u32 %v3419_v25, 16  ;;  %v4141_v25 = vld [vmem:[%s3887_s19 + $0x68] sm:$0xf] }
  0x6d   : > { %689 = vrot.lane.b32.xlu0 %v665_v30, %s3833_s21  ;;  %v1365_v30 = vrot.slane %v3522_v21, 1  ;;  %v3390_v21 = vld [vmem:[%s3887_s19 + $0x30] sm:$0xe] }
  0x6e   : > { %787 = vrot.lane.b32.xlu1 %v3452_v33, %s3832_s20  ;;  %v666_v33 = vrot.slane %v3439_v24, 1  ;;  %v871_v43 = vor.u32 %v870_v32, %v866_v31  ;;  %v527_v48 = vrot.slane %v525_v36, 1  ;;  %v875_v24 = vshll.u32 %v3461_v10, 16  ;;  %v223_v31 = vld [vmem:[%s3887_s19 + $0x60] sm:$0xf] }
  0x6f   : > { %v4149_v32 = vld [vmem:[%s3887_s19 + $0x64] sm:$0xf]  ;;  %v253_v10 = vld [vmem:[%s3887_s19 + $0x60] sm:$0xe] }
  0x70   : > { %v3426_v45 = vcombine.low %v223_v31, %v4149_v32 }
  0x71   : > { %1387 = vrot.lane.b32.xlu0 %v1364_v38, %s3839_s27 }
  0x72   : > { %955 = vrot.lane.b32.xlu1 %v913_v40, %s3837_s25  ;;  %v3311_v40 = vld [vmem:[%s3887_s19 + $0x64] sm:$0x7] }
  0x73   : > { %v3453_v46 = vcombine.low %v3310_v39, %v3311_v40 }
  0x75   : > { %1123 = vrot.lane.b32.xlu0 %v3487_v44, %s3834_s22  ;;  %v3467_v44 = vcombine.low %v3310_v39, %v4098_v34 }
  0x76   : > { %1039 = vrot.lane.b32.xlu1 %v1015_v49, %s3835_s23  ;;  %v1218_v49 = vshll.u32 %v3502_v37, 16 }
  0x77   : > { %v917_v56 = vshll.u32 %v3467_v44, 16  ;;  %v915_v4 = vshrl.u32 %v3467_v44, 16  ;;  %v3335_v44 = vld [vmem:[%s3887_s19 + $0x30] sm:$0xe] }
  0x78   : > { %v1220_v59 = vrot.slane %v1218_v49, 1 }
  0x79   : > { %1291 = vrot.lane.b32.xlu0 %v1214_v57, %s3838_s26  ;;  %v528_v57 = vor.u32 %v527_v48, %v523_v47  ;;  %v919_v2 = vrot.slane %v917_v56, 1  ;;  %v3367_v56 = vld [vmem:[%s3887_s19 + $0x6c] sm:$0x7] }
  0x7a   : > { %593 = vrot.lane.b32.xlu1 %v521_v60, %s3836_s24  ;;  %v1221_v6 = vor.u32 %v1220_v59, %v1216_v58 }
  0x7b   : > { %v920_v17 = vor.u32 %v919_v2, %v915_v4  ;;  %v572_v4 = vshrl.u32 %v3426_v45, 16 }
  0x7d   : > { %1375 = vrot.lane.b32.xlu0 %v1358_v63, %s3839_s27 }
  0x7e   : > { %677 = vrot.lane.b32.xlu1 %v659_v1, %s3833_s21  ;;  %v3488_v1 = vcombine.low %v4090_v26, %v3353_v55  ;;  %v4144_v26 = vld [vmem:[%s3887_s19 + $0x6c] sm:$0xf] }
  0x7f   : > { %v3509_v39 = vcombine.low %v4141_v25, %v4144_v26 }
  0x81   : > { %1137 = vrot.lane.b32.xlu0 %v3494_v8, %s3834_s22  ;;  %v3481_v8 = vcombine.low %v3341_v61, %v4098_v34  ;;  %v1662_v34 = vshrl.u32 %v1661_v16, 7 }
  0x82   : > { %775 = vrot.lane.b32.xlu1 %v3446_v12, %s3832_s20 }
  0x84   : > { %v768_v29 = vpop.permute.xlu1 %767 }
  0x85   : > { %1305 = vrot.lane.b32.xlu0 %v1263_v19, %s3838_s26  ;;  %v3433_v19 = vcombine.low %v246_v9, %v4084_v18  ;;  %v1660_v18 = vunpack.c.0.s8 %v1659_v15 }
  0x86   : > { %607 = vrot.lane.b32.xlu1 %v570_v23, %s3836_s24  ;;  %v1016_v23 = vrot.slane %v3481_v8, 1 }
  0x87   : > { %v670_v38 = vpop.permute.xlu0 %669  ;;  %v660_v37 = vrot.slane %v3433_v19, 1  ;;  %v4164_v48 = vsub.s32 %v1660_v18, %v1662_v34 }
  0x88   : > { %v4105_v41 = vpop.permute.xlu1 %1117 }
  0x89   : > { %1389 = vrot.lane.b32.xlu0 %v1365_v30, %s3839_s27  ;;  %v3299_v30 = vld [vmem:[%s3887_s19 + $0x34] sm:$0x7] }
  0x8a   : > { %691 = vrot.lane.b32.xlu1 %v666_v33, %s3833_s21  ;;  %v202_v33 = vld [vmem:[%s3887_s19 + $0xc] sm:$0x7]  ;;  %v3447_v40 = vcombine.low %v4119_v62, %v3299_v30  ;;  %v3495_v62 = vcombine.low %v4141_v25, %v3367_v56 }
  0x8b   : > { %v4111_v50 = vpop.permute.xlu0 %671 }
  0x8c   : > { %v1020_v53 = vpop.permute.xlu1 %1019 }
  0x8d   : > { %943 = vrot.lane.b32.xlu0 %v871_v43, %s3837_s25  ;;  %v877_v43 = vrot.slane %v875_v24, 1 }
  0x8e   : > { %789 = vrot.lane.b32.xlu1 %v3453_v46, %s3832_s20 }
  0x8f   : > { %v586_v60 = vpop.permute.xlu0 %585  ;;  %v878_v55 = vor.u32 %v877_v43, %v873_v42  ;;  %v3312_v43 = vld [vmem:[%s3887_s19 + $0x68] sm:$0xf] }
  0x90   : > { %v1400_v63 = vsel %vm1397_vm2, %v3400_v52, %v586_v60  ;;  %v936_v0 = vpop.permute.xlu1 %935 }
  0x91   : > { %v1442_v3 = vsel %vm1440_vm3, %v1400_v63, %v670_v38  ;;  %1027 = vrot.lane.b32.xlu0 %v1009_v54, %s3835_s23  ;;  %v3516_v38 = vcombine.low %v3390_v21, %v4093_v27  ;;  %v1267_v54 = vshll.u32 %v3509_v39, 16  ;;  %v1265_v63 = vshrl.u32 %v3509_v39, 16 }
  0x92   : > { %v1471_v5 = vsel %vm1469_vm4, %v1442_v3, %v768_v29  ;;  %595 = vrot.lane.b32.xlu1 %v528_v57, %s3836_s24 }
  0x93   : > { %v1500_v11 = vsel %vm1498_vm5, %v1471_v5, %v936_v0  ;;  %v588_v12 = vpop.permute.xlu0 %587  ;;  %v1359_v52 = vrot.slane %v3516_v38, 1  ;;  %v1269_v0 = vrot.slane %v1267_v54, 1  ;;  %v4180_v5 = vld [vmem:[%s3887_s19 + $0x38] sm:$0xf] }
  0x94   : > { %v1286_v13 = vpop.permute.xlu1 %1285  ;;  %v1529_v22 = vsel %vm1527_vm6, %v1500_v11, %v1020_v53  ;;  %v3475_v53 = vcombine.low %v3335_v44, %v4122_v7  ;;  %v211_v11 = vld [vmem:[%s3887_s19 + $0x30] sm:$0xf]  ;;  %v3313_v44 = vld [vmem:[%s3887_s19 + $0x6c] sm:$0x7] }
  0x95   : > { %1125 = vrot.lane.b32.xlu0 %v3488_v1, %s3834_s22  ;;  %v1558_v36 = vsel %vm1556_vm7, %v1529_v22, %v4105_v41  ;;  %v3401_v41 = vcombine.low %v3905_v20, %v202_v33  ;;  %v574_v20 = vshll.u32 %v3426_v45, 16  ;;  %v3397_v1 = vld [vmem:[%s3887_s19 + $0x68] sm:$0xe]  ;;  %v3355_v33 = vld [vmem:[%s3887_s19 + $0x3c] sm:$0x7]  ;;  %v3454_v56 = vcombine.low %v3312_v43, %v3313_v44 }
  0x96   : > { %1293 = vrot.lane.b32.xlu1 %v1221_v6, %s3838_s26  ;;  %v1587_v47 = vsel %vm1585_vm8, %v1558_v36, %v1286_v13  ;;  %v1010_v7 = vrot.slane %v3475_v53, 1  ;;  %v4183_v6 = vld [vmem:[%s3887_s19 + $0x3c] sm:$0xf]  ;;  %v3523_v19 = vcombine.low %v3397_v1, %v4144_v26  ;;  %v4216_v36 = vld [vmem:[%s3887_s19 + $0x6c] sm:$0xf]  ;;  %v3489_v42 = vcombine.low %v4180_v5, %v3355_v33 }
  0x97   : > { %v770_v29 = vpop.permute.xlu0 %769  ;;  %v1403_v57 = vsel %vm1397_vm2, %v3401_v41, %v588_v12  ;;  %v576_v2 = vrot.slane %v574_v20, 1  ;;  %v4191_v12 = vld [vmem:[%s3887_s19 + $0x34] sm:$0xf]  ;;  %v3503_v21 = vcombine.low %v4180_v5, %v4183_v6  ;;  %v3342_v33 = vld [vmem:[%s3887_s19 + $0x68] sm:$0xe] }
  0x98   : > { %v1370_v35 = vpop.permute.xlu1 %1369  ;;  %v1444_v3 = vsel %vm1440_vm3, %v1403_v57, %v4111_v50  ;;  %v3420_v24 = vcombine.low %v211_v11, %v4191_v12  ;;  %v1366_v18 = vrot.slane %v3523_v19, 1 }
  0x99   : > { %957 = vrot.lane.b32.xlu0 %v920_v17, %s3837_s25  ;;  %v1616_v49 = vsel %vm1614_vm9, %v1587_v47, %v1370_v35  ;;  %v1473_v8 = vsel %vm1469_vm4, %v1444_v3, %v770_v29  ;;  %v1270_v17 = vor.u32 %v1269_v0, %v1265_v63  ;;  %v577_v22 = vor.u32 %v576_v2, %v572_v4 }
  0x9a   : > { %1041 = vrot.lane.b32.xlu1 %v1016_v23, %s3835_s23  ;;  %v1657_v59 = vcombine.high %v1616_v49, %v1616_v49  ;;  %v1664_v60 = vrot.slane %v1616_v49, %v4164_v48  ;;  %v3440_v23 = vcombine.low %v253_v10, %v4149_v32  ;;  %v1225_v34 = vshll.u32 %v3503_v21, 16 }
  0x9b   : > { %v938_v46 = vpop.permute.xlu0 %937  ;;  %v1223_v53 = vshrl.u32 %v3503_v21, 16  ;;  %v530_v20 = vshrl.u32 %v3420_v24, 16 }
  0x9c   : > { %v1120_v27 = vpop.permute.xlu1 %1119  ;;  %v1671_v13 = vrot.slane %v1657_v59, %v4164_v48  ;;  %v1672_v14 = vcombine.high %v1664_v60, %v1664_v60  ;;  %v1502_v50 = vsel %vm1498_vm5, %v1473_v8, %v938_v46  ;;  %v1680_v32 = vrot.slane %v1664_v60, %v4164_v48  ;;  %v4239_v59 = vld [vmem:[%s3887_s19 + $0x6c] sm:$0xf] }
  0x9d   : > { %679 = vrot.lane.b32.xlu0 %v660_v37, %s3833_s21  ;;  %v667_v35 = vrot.slane %v3440_v23, 1  ;;  %v532_v37 = vshll.u32 %v3420_v24, 16  ;;  %v1227_v54 = vrot.slane %v1225_v34, 1  ;;  %v3300_v24 = vld [vmem:[%s3887_s19 + $0x38] sm:$0xf] }
  0x9e   : > { %777 = vrot.lane.b32.xlu1 %v3447_v40, %s3832_s20  ;;  %v1673_v29 = vcombine.high %v1671_v13, %v1671_v13  ;;  %v1694_v30 = vrot.slane %v1672_v14, %v4164_v48  ;;  %v1687_v38 = vrot.slane %v1671_v13, %v4164_v48  ;;  %v4259_v14 = vld [vmem:[%s3887_s19 + $0x70] sm:$0xf] }
  0x9f   : > { %v1022_v58 = vpop.permute.xlu0 %1021  ;;  %v534_v57 = vrot.slane %v532_v37, 1  ;;  %v1228_v4 = vor.u32 %v1227_v54, %v1223_v53 }
  0xa0   : > { %v1288_v61 = vpop.permute.xlu1 %1287  ;;  %v1531_v16 = vsel %vm1527_vm6, %v1502_v50, %v1022_v58  ;;  %v1701_v45 = vrot.slane %v1673_v29, %v4164_v48  ;;  %v2341_v41 = vcombine.low %v1680_v32, %v1694_v30  ;;  %v3527_v46 = vcombine.high %v1680_v32, %v1694_v30  ;;  %v225_v58 = vld [vmem:[%s3887_s19 + $0x68] sm:$0xf]  ;;  %v4262_v50 = vld [vmem:[%s3887_s19 + $0x74] sm:$0xf]  ;;  %v3301_v29 = vld [vmem:[%s3887_s19 + $0x3c] sm:$0x7] }
  0xa1   : > { %1377 = vrot.lane.b32.xlu0 %v1359_v52, %s3839_s27  ;;  %v1560_v31 = vsel %vm1556_vm7, %v1531_v16, %v1120_v27  ;;  %v3468_v52 = vcombine.low %v3312_v43, %v4216_v36  ;;  %v1703_v1 = vcombine.high %v1687_v38, %v1687_v38  ;;  %v3427_v8 = vcombine.low %v225_v58, %v4239_v59  ;;  %v204_v16 = vld [vmem:[%s3887_s19 + $0x14] sm:$0x7]  ;;  %v4272_v30 = vld [vmem:[%s3887_s19 + $0x3c] sm:$0xf] }
  0xa2   : > { %945 = vrot.lane.b32.xlu1 %v878_v55, %s3837_s25  ;;  %v1589_v39 = vsel %vm1585_vm8, %v1560_v31, %v1288_v61  ;;  %v3391_v55 = vld [vmem:[%s3887_s19 + $0x38] sm:$0xe]  ;;  %v2351_v63 = vrot.slane %v2341_v41, %v4164_v48  ;;  %v2358_v0 = vrot.slane %v3527_v46, %v4164_v48  ;;  %v535_v11 = vor.u32 %v534_v57, %v530_v20 }
  0xa3   : > { %v4186_v9 = vpop.permute.xlu0 %589  ;;  %v3517_v2 = vcombine.low %v3391_v55, %v4183_v6  ;;  %v924_v5 = vshll.u32 %v3468_v52, 16  ;;  %v3510_v34 = vcombine.low %v4259_v14, %v4262_v50  ;;  %v3402_v32 = vcombine.low %v3925_v51, %v204_v16  ;;  %v254_v16 = vld [vmem:[%s3887_s19 + $0x68] sm:$0xe] }
  0xa4   : > { %v4195_v15 = vpop.permute.xlu1 %673  ;;  %v2373_v21 = vcombine.low %v2351_v63, %v2358_v0  ;;  %v3462_v44 = vcombine.low %v3300_v24, %v4272_v30  ;;  %v579_v51 = vshrl.u32 %v3427_v8, 16 }
  0xa5   : > { %1139 = vrot.lane.b32.xlu0 %v3495_v62, %s3834_s22  ;;  %v247_v62 = vld [vmem:[%s3887_s19 + $0x30] sm:$0xe]  ;;  %v926_v31 = vrot.slane %v924_v5, 1  ;;  %v1406_v53 = vsel %vm1397_vm2, %v3402_v32, %v4186_v9 }
  0xa6   : > { %1029 = vrot.lane.b32.xlu1 %v1010_v7, %s3835_s23  ;;  %v2343_v7 = vcombine.low %v1687_v38, %v1701_v45  ;;  %v3434_v13 = vcombine.low %v247_v62, %v4191_v12  ;;  %v1360_v12 = vrot.slane %v3517_v2, 1  ;;  %v3482_v45 = vcombine.low %v3342_v33, %v4216_v36  ;;  %v4313_v2 = vld [vmem:[%s3887_s19 + $0x74] sm:$0xf] }
  0xa7   : > { %v4205_v25 = vpop.permute.xlu0 %601  ;;  %v882_v57 = vshll.u32 %v3462_v44, 16  ;;  %v1446_v9 = vsel %vm1440_vm3, %v1406_v53, %v4195_v15  ;;  %v1272_v62 = vshrl.u32 %v3510_v34, 16 }
  0xa8   : > { %v4209_v26 = vpop.permute.xlu1 %685  ;;  %v2365_v19 = vrot.slane %v2343_v7, %v4164_v48  ;;  %v661_v37 = vrot.slane %v3434_v13, 1  ;;  %v3336_v7 = vld [vmem:[%s3887_s19 + $0x38] sm:$0xe]  ;;  %v880_v13 = vshrl.u32 %v3462_v44, 16 }
  0xa9   : > { %1307 = vrot.lane.b32.xlu0 %v1270_v17, %s3838_s26  ;;  %v922_v17 = vshrl.u32 %v3468_v52, 16  ;;  %v1274_v52 = vshll.u32 %v3510_v34, 16 }
  0xaa   : > { %609 = vrot.lane.b32.xlu1 %v577_v22, %s3836_s24 }
  0xab   : > { %v1372_v40 = vpop.permute.xlu0 %1371  ;;  %v927_v41 = vor.u32 %v926_v31, %v922_v17  ;;  %v1276_v15 = vrot.slane %v1274_v52, 1  ;;  %v216_v17 = vld [vmem:[%s3887_s19 + $0x44] sm:$0x7]  ;;  %v4356_v52 = vld [vmem:[%s3887_s19 + $0x3c] sm:$0xf] }
  0xac   : > { %v4225_v47 = vsel %vm1614_vm9, %v1589_v39, %v1372_v40  ;;  %v4227_v27 = vpop.permute.xlu1 %783  ;;  %v3448_v39 = vcombine.low %v3300_v24, %v3301_v29 }
  0xad   : > { %v4231_v49 = vrot.slane %v4225_v47, %v4164_v48  ;;  %1391 = vrot.lane.b32.xlu0 %v1366_v18, %s3839_s27  ;;  %v581_v18 = vshll.u32 %v3427_v8, 16  ;;  %v1705_v54 = vcombine.high %v4225_v47, %v4225_v47  ;;  %v1017_v47 = vrot.slane %v3482_v45, 1 }
  0xae   : > { %693 = vrot.lane.b32.xlu1 %v667_v35, %s3833_s21 }
  0xaf   : > { %v4243_v60 = vrot.slane %v4231_v49, %v4164_v48  ;;  %v4245_v61 = vpop.permute.xlu0 %771  ;;  %v583_v46 = vrot.slane %v581_v18, 1  ;;  %v1720_v55 = vcombine.high %v4231_v49, %v4231_v49  ;;  %v3369_v49 = vld [vmem:[%s3887_s19 + $0x74] sm:$0x7]  ;;  %v1719_v63 = vrot.slane %v1705_v54, %v4164_v48  ;;  %v3798_v18 = vld [vmem:[%s3887_s19 + $0x40] sm:$0xf] }
  0xb0   : > { %v4250_v3 = vpop.permute.xlu1 %951  ;;  %v3408_v34 = vcombine.low %v3798_v18, %v216_v17 }
  0xb1   : > { %1127 = vrot.lane.b32.xlu0 %v3489_v42, %s3834_s22  ;;  %v2344_v10 = vcombine.low %v1703_v1, %v4243_v60  ;;  %v2381_v42 = vrot.slane %v2373_v21, %v4164_v48  ;;  %v584_v58 = vor.u32 %v583_v46, %v579_v51  ;;  %v1742_v0 = vrot.slane %v1720_v55, %v4164_v48  ;;  %v4350_v51 = vld [vmem:[%s3887_s19 + $0x44] sm:$0xf]  ;;  %v4353_v46 = vld [vmem:[%s3887_s19 + $0x38] sm:$0xf] }
  0xb2   : > { %791 = vrot.lane.b32.xlu1 %v3454_v56, %s3832_s20  ;;  %v1475_v1 = vsel %vm1469_vm4, %v1446_v9, %v4245_v61  ;;  %v3496_v61 = vcombine.low %v4259_v14, %v3369_v49  ;;  %v3476_v21 = vcombine.low %v3336_v7, %v4272_v30  ;;  %v1735_v24 = vrot.slane %v1719_v63, %v4164_v48 }
  0xb3   : > { %v940_v6 = vpop.permute.xlu0 %939  ;;  %v2372_v22 = vrot.slane %v2344_v10, %v4164_v48  ;;  %v1752_v29 = vcombine.high %v1742_v0, %v1742_v0  ;;  %v3441_v14 = vcombine.low %v254_v16, %v4239_v59  ;;  %v1750_v30 = vcombine.high %v4243_v60, %v4243_v60  ;;  %v3398_v59 = vld [vmem:[%s3887_s19 + $0x70] sm:$0xe] }
  0xb4   : > { %v4267_v23 = vpop.permute.xlu1 %603  ;;  %v1504_v5 = vsel %vm1498_vm5, %v1475_v1, %v940_v6  ;;  %v1751_v44 = vcombine.high %v1735_v24, %v1735_v24  ;;  %v1424_v49 = vsel %vm1397_vm2, %v3408_v34, %v4205_v25  ;;  %v3421_v1 = vcombine.low %v4353_v46, %v4356_v52 }
  0xb5   : > { %1295 = vrot.lane.b32.xlu0 %v1228_v4, %s3838_s26  ;;  %v2374_v35 = vcombine.low %v2365_v19, %v2372_v22  ;;  %v4310_v4 = vld [vmem:[%s3887_s19 + $0x70] sm:$0xf]  ;;  %v884_v19 = vrot.slane %v882_v57, 1  ;;  %v1721_v22 = vcombine.high %v1719_v63, %v1719_v63  ;;  %v2391_v45 = vcombine.low %v1752_v29, %v1735_v24 }
  0xb6   : > { %597 = vrot.lane.b32.xlu1 %v535_v11, %s3836_s24  ;;  %v3469_v6 = vcombine.low %v4310_v4, %v4313_v2  ;;  %v668_v54 = vrot.slane %v3441_v14, 1  ;;  %v3343_v63 = vld [vmem:[%s3887_s19 + $0x70] sm:$0xe] }
  0xb7   : > { %v1024_v38 = vpop.permute.xlu0 %1023  ;;  %v2388_v43 = vrot.slane %v2374_v35, %v4164_v48  ;;  %v1749_v60 = vrot.slane %v1721_v22, %v4164_v48  ;;  %v3483_v17 = vcombine.low %v3343_v63, %v4313_v2 }
  0xb8   : > { %v1122_v40 = vpop.permute.xlu1 %1121  ;;  %v1533_v10 = vsel %vm1527_vm6, %v1504_v5, %v1024_v38 }
  0xb9   : > { %1379 = vrot.lane.b32.xlu0 %v1360_v12, %s3839_s27  ;;  %v2389_v36 = vcombine.low %v2381_v42, %v2388_v43  ;;  %v1277_v12 = vor.u32 %v1276_v15, %v1272_v62  ;;  %v1562_v31 = vsel %vm1556_vm7, %v1533_v10, %v1122_v40  ;;  %v1011_v40 = vrot.slane %v3476_v21, 1  ;;  %v4343_v43 = vld [vmem:[%s3887_s19 + $0x40] sm:$0xf] }
  0xba   : > { %681 = vrot.lane.b32.xlu1 %v661_v37, %s3833_s21  ;;  %v3315_v37 = vld [vmem:[%s3887_s19 + $0x74] sm:$0x7]  ;;  %v931_v42 = vshll.u32 %v3469_v6, 16  ;;  %v3504_v7 = vcombine.low %v4343_v43, %v4350_v51  ;;  %v2407_v15 = vrot.slane %v2391_v45, %v4164_v48  ;;  %v4420_v45 = vld [vmem:[%s3887_s19 + $0x40] sm:$0xf] }
  0xbb   : > { %v4292_v56 = vpop.permute.xlu0 %1035  ;;  %3576 = vmatmul.mubr.msk.bf16.vlgmr.msra.gmra.mxu0 %vm2959_vm10, %v2389_v36  ;;  %v3455_v55 = vcombine.low %v4310_v4, %v3315_v37  ;;  %v2390_v36 = vcombine.low %v1742_v0, %v1750_v30  ;;  %v2392_v0 = vcombine.low %v1749_v60, %v1751_v44  ;;  %v248_v44 = vld [vmem:[%s3887_s19 + $0x38] sm:$0xe] }
  0xbc   : > { %v4295_v20 = vpop.permute.xlu1 %1133  ;;  %3579 = vmatprep.mubr.msk.bf16.mxu0 %vm3841_vm1, %v3840_v28  ;;  %v933_v62 = vrot.slane %v931_v42, 1  ;;  %v1232_v21 = vshll.u32 %v3504_v7, 16  ;;  %v1230_v30 = vshrl.u32 %v3504_v7, 16  ;;  %v4414_v42 = vld [vmem:[%s3887_s19 + $0x7c] sm:$0xf] }
  0xbd   : > { %959 = vrot.lane.b32.xlu0 %v927_v41, %s3837_s25  ;;  %v2400_v5 = vrot.slane %v2390_v36, %v4164_v48  ;;  %v2414_v24 = vrot.slane %v2392_v0, %v4164_v48 }
  0xbe   : > { %779 = vrot.lane.b32.xlu1 %v3448_v39, %s3832_s20  ;;  %v885_v39 = vor.u32 %v884_v19, %v880_v13 }
  0xbf   : > { %v4316_v8 = vpop.permute.xlu0 %687  ;;  %v2422_v2 = vcombine.low %v2400_v5, %v2407_v15 }
  0xc0   : > { %v4319_v11 = vpop.permute.xlu1 %785 }
  0xc1   : > { %1043 = vrot.lane.b32.xlu0 %v1017_v47, %s3835_s23  ;;  %v3524_v47 = vcombine.low %v3398_v59, %v4262_v50  ;;  %v2430_v37 = vrot.slane %v2422_v2, %v4164_v48  ;;  %v4411_v59 = vld [vmem:[%s3887_s19 + $0x78] sm:$0xf] }
  0xc2   : > { %611 = vrot.lane.b32.xlu1 %v584_v58, %s3836_s24  ;;  %v929_v58 = vshrl.u32 %v3469_v6, 16  ;;  %v539_v6 = vshll.u32 %v3421_v1, 16 }
  0xc3   : > { %v1290_v33 = vpop.permute.xlu0 %1289  ;;  %v1367_v16 = vrot.slane %v3524_v47, 1 }
  0xc4   : > { %v1591_v32 = vsel %vm1585_vm8, %v1562_v31, %v1290_v33  ;;  %v1374_v35 = vpop.permute.xlu1 %1373  ;;  %v934_v19 = vor.u32 %v933_v62, %v929_v58  ;;  %v218_v33 = vld [vmem:[%s3887_s19 + $0x4c] sm:$0x7]  ;;  %v3511_v62 = vcombine.low %v4411_v59, %v4414_v42 }
  0xc5   : > { %v4338_v38 = vsel %vm1614_vm9, %v1591_v32, %v1374_v35  ;;  %1141 = vrot.lane.b32.xlu0 %v3496_v61, %s3834_s22  ;;  %v1458_v61 = vsel %vm1440_vm3, %v1424_v49, %v4209_v26  ;;  %v1018_v32 = vrot.slane %v3483_v17, 1  ;;  %v3392_v35 = vld [vmem:[%s3887_s19 + $0x40] sm:$0xe] }
  0xc6   : > { %v1760_v41 = vrot.slane %v4338_v38, %v4164_v48  ;;  %1309 = vrot.lane.b32.xlu1 %v1277_v12, %s3838_s26  ;;  %v1487_v22 = vsel %vm1469_vm4, %v1458_v61, %v4227_v27  ;;  %v3357_v12 = vld [vmem:[%s3887_s19 + $0x44] sm:$0x7]  ;;  %v3371_v61 = vld [vmem:[%s3887_s19 + $0x7c] sm:$0x7]  ;;  %v1279_v2 = vshrl.u32 %v3511_v62, 16 }
  0xc7   : > { %v4358_v53 = vpop.permute.xlu0 %1301  ;;  %v1516_v26 = vsel %vm1498_vm5, %v1487_v22, %v4250_v3  ;;  %v3490_v34 = vcombine.low %v4343_v43, %v3357_v12  ;;  %v1234_v3 = vrot.slane %v1232_v21, 1  ;;  %v206_v22 = vld [vmem:[%s3887_s19 + $0x1c] sm:$0x7]  ;;  %v3497_v12 = vcombine.low %v4411_v59, %v3371_v61 }
  0xc8   : > { %v1768_v57 = vcombine.high %v1760_v41, %v1760_v41  ;;  %v4361_v9 = vpop.permute.xlu1 %953  ;;  %v4374_v4 = vrot.slane %v1760_v41, %v4164_v48  ;;  %v1545_v14 = vsel %vm1527_vm6, %v1516_v26, %v4292_v56  ;;  %v4423_v41 = vld [vmem:[%s3887_s19 + $0x44] sm:$0xf] }
  0xc9   : > { %947 = vrot.lane.b32.xlu0 %v885_v39, %s3837_s25  ;;  %v537_v39 = vshrl.u32 %v3421_v1, 16  ;;  %v1574_v43 = vsel %vm1556_vm7, %v1545_v14, %v4295_v20  ;;  %v1235_v49 = vor.u32 %v1234_v3, %v1230_v30  ;;  %v3518_v20 = vcombine.low %v3392_v35, %v4350_v51  ;;  %v3358_v30 = vld [vmem:[%s3887_s19 + $0x48] sm:$0xf]  ;;  %v3379_v3 = vld [vmem:[%s3887_s19 + $0x4c] sm:$0xf] }
  0xca   : > { %v4377_v50 = vrot.slane %v1768_v57, %v4164_v48  ;;  %1031 = vrot.lane.b32.xlu1 %v1011_v40, %s3835_s23  ;;  %v541_v40 = vrot.slane %v539_v6, 1  ;;  %v1603_v36 = vsel %vm1585_vm8, %v1574_v43, %v4358_v53  ;;  %v3435_v53 = vcombine.low %v248_v44, %v4356_v52  ;;  %v3303_v6 = vld [vmem:[%s3887_s19 + $0x44] sm:$0x7] }
  0xcb   : > { %v4380_v25 = vpop.permute.xlu0 %591  ;;  %v3463_v63 = vcombine.low %v4420_v45, %v4423_v41  ;;  %v1281_v52 = vshll.u32 %v3511_v62, 16  ;;  %v3449_v14 = vcombine.low %v4420_v45, %v3303_v6  ;;  %v3505_v44 = vcombine.low %v3358_v30, %v3379_v3  ;;  %v3393_v62 = vld [vmem:[%s3887_s19 + $0x48] sm:$0xe] }
  0xcc   : > { %v2393_v10 = vcombine.low %v4374_v4, %v4377_v50  ;;  %v4385_v13 = vpop.permute.xlu1 %675  ;;  %v542_v7 = vor.u32 %v541_v40, %v537_v39  ;;  %v662_v17 = vrot.slane %v3435_v53, 1 }
  0xcd   : > { %695 = vrot.lane.b32.xlu0 %v668_v54, %s3833_s21  ;;  %v3799_v54 = vld [vmem:[%s3887_s19 + $0x48] sm:$0xf]  ;;  %v1283_v26 = vrot.slane %v1281_v52, 1 }
  0xce   : > { %v2421_v29 = vrot.slane %v2393_v10, %v4164_v48  ;;  %793 = vrot.lane.b32.xlu1 %v3455_v55, %s3832_s20  ;;  %v3409_v55 = vcombine.low %v3799_v54, %v218_v33  ;;  %v1361_v10 = vrot.slane %v3518_v20, 1  ;;  %v3337_v54 = vld [vmem:[%s3887_s19 + $0x40] sm:$0xe]  ;;  %v3359_v20 = vld [vmem:[%s3887_s19 + $0x4c] sm:$0x7] }
  0xcf   : > { %v1386_v31 = vpop.permute.xlu0 %1385  ;;  %v1284_v43 = vor.u32 %v1283_v26, %v1279_v2 }
  0xd0   : > { %v2423_v27 = vcombine.low %v2414_v24, %v2421_v29  ;;  %v4402_v18 = vpop.permute.xlu1 %773  ;;  %v1632_v58 = vsel %vm1614_vm9, %v1603_v36, %v1386_v31  ;;  %v1427_v5 = vsel %vm1397_vm2, %v3409_v55, %v4267_v23  ;;  %v3399_v31 = vld [vmem:[%s3887_s19 + $0x78] sm:$0xe] }
  0xd1   : > { %1393 = vrot.lane.b32.xlu0 %v1367_v16, %s3839_s27  ;;  %v2041_v51 = vcombine.high %v1632_v58, %v1632_v58  ;;  %v2048_v0 = vrot.slane %v1632_v58, %v4164_v48  ;;  %v1460_v16 = vsel %vm1440_vm3, %v1427_v5, %v4316_v8  ;;  %v3491_v5 = vcombine.low %v3358_v30, %v3359_v20 }
  0xd2   : > { %961 = vrot.lane.b32.xlu1 %v934_v19, %s3837_s25  ;;  %v2437_v56 = vrot.slane %v2423_v27, %v4164_v48  ;;  %v889_v19 = vshll.u32 %v3463_v63, 16  ;;  %v1489_v8 = vsel %vm1469_vm4, %v1460_v16, %v4319_v11  ;;  %v887_v27 = vshrl.u32 %v3463_v63, 16 }
  0xd3   : > { %v1038_v60 = vpop.permute.xlu0 %1037  ;;  %v2055_v23 = vrot.slane %v2041_v51, %v4164_v48  ;;  %v2056_v24 = vcombine.high %v2048_v0, %v2048_v0  ;;  %v1518_v33 = vsel %vm1498_vm5, %v1489_v8, %v4361_v9  ;;  %v1753_v11 = vcombine.high %v4338_v38, %v4338_v38 }
  0xd4   : > { %v4428_v57 = vpop.permute.xlu1 %605  ;;  %v2438_v47 = vcombine.low %v2430_v37, %v2437_v56  ;;  %v1547_v37 = vsel %vm1527_vm6, %v1518_v33, %v1038_v60  ;;  %v3525_v38 = vcombine.low %v3399_v31, %v4414_v42  ;;  %v2064_v45 = vrot.slane %v2048_v0, %v4164_v48 }
  0xd5   : > { %1129 = vrot.lane.b32.xlu0 %v3490_v34, %s3834_s22  ;;  %v891_v34 = vrot.slane %v889_v19, 1  ;;  %v2057_v39 = vcombine.high %v2055_v23, %v2055_v23  ;;  %v2078_v9 = vrot.slane %v2056_v24, %v4164_v48  ;;  %v1767_v55 = vrot.slane %v1753_v11, %v4164_v48 }
  0xd6   : > { %1045 = vrot.lane.b32.xlu1 %v1018_v32, %s3835_s23  ;;  %3580 = vmatmul.mubr.msk.bf16.gmra.mxu0 %vm2959_vm10, %v2438_v47  ;;  %v3800_v32 = vld [vmem:[%s3887_s19 + $0x18] sm:$0xf]  ;;  %v2071_v47 = vrot.slane %v2055_v23, %v4164_v48  ;;  %v3477_v0 = vcombine.low %v3337_v54, %v4423_v41  ;;  %v1237_v8 = vshrl.u32 %v3505_v44, 16 }
  0xd7   : > { %v1136_v1 = vpop.permute.xlu0 %1135  ;;  %3583 = vmatprep.mubr.msk.bf16.mxu0 %vm3841_vm1, %v3840_v28  ;;  %v3403_v35 = vcombine.low %v3800_v32, %v206_v22  ;;  %v892_v60 = vor.u32 %v891_v34, %v887_v27  ;;  %v2085_v42 = vrot.slane %v2057_v39, %v4164_v48  ;;  %v3531_v53 = vcombine.high %v2064_v45, %v2078_v9  ;;  %v220_v34 = vld [vmem:[%s3887_s19 + $0x54] sm:$0x7] }
  0xd8   : > { %v1304_v15 = vpop.permute.xlu1 %1303  ;;  %v1576_v40 = vsel %vm1556_vm7, %v1547_v37, %v1136_v1  ;;  %v1769_v52 = vcombine.high %v1767_v55, %v1767_v55  ;;  %v2087_v41 = vcombine.high %v2071_v47, %v2071_v47  ;;  %v1783_v11 = vrot.slane %v1767_v55, %v4164_v48 }
  0xd9   : > { %1297 = vrot.lane.b32.xlu0 %v1235_v49, %s3838_s26  ;;  %v1409_v36 = vsel %vm1397_vm2, %v3403_v35, %v4380_v25  ;;  %v1605_v58 = vsel %vm1585_vm8, %v1576_v40, %v1304_v15  ;;  %v1368_v25 = vrot.slane %v3525_v38, 1  ;;  %v1239_v15 = vshll.u32 %v3505_v44, 16 }
  0xda   : > { %599 = vrot.lane.b32.xlu1 %v542_v7, %s3836_s24  ;;  %v2684_v7 = vcombine.low %v2064_v45, %v2078_v9  ;;  %v1448_v16 = vsel %vm1440_vm3, %v1409_v36, %v4385_v13  ;;  %v2686_v19 = vcombine.low %v2071_v47, %v2085_v42  ;;  %v2701_v22 = vrot.slane %v3531_v53, %v4164_v48  ;;  %v3801_v9 = vld [vmem:[%s3887_s19 + $0x50] sm:$0xf] }
  0xdb   : > { %v4450_v21 = vpop.permute.xlu0 %941  ;;  %v1477_v24 = vsel %vm1469_vm4, %v1448_v16, %v4402_v18  ;;  %v1012_v13 = vrot.slane %v3477_v0, 1  ;;  %v1797_v33 = vrot.slane %v1769_v52, %v4164_v48  ;;  %v3410_v40 = vcombine.low %v3801_v9, %v220_v34 }
  0xdc   : > { %v4455_v29 = vpop.permute.xlu1 %1025  ;;  %v2694_v6 = vrot.slane %v2684_v7, %v4164_v48  ;;  %v1506_v2 = vsel %vm1498_vm5, %v1477_v24, %v4450_v21  ;;  %v2708_v27 = vrot.slane %v2686_v19, %v4164_v48  ;;  %v3528_v47 = vcombine.high %v4374_v4, %v4377_v50 }
  0xdd   : > { %1381 = vrot.lane.b32.xlu0 %v1361_v10, %s3839_s27  ;;  %v3519_v10 = vcombine.low %v3393_v62, %v3379_v3  ;;  %v1535_v21 = vsel %vm1527_vm6, %v1506_v2, %v4455_v29  ;;  %v2440_v39 = vcombine.low %v1783_v11, %v1797_v33 }
  0xde   : > { %683 = vrot.lane.b32.xlu1 %v662_v17, %s3833_s21  ;;  %v2716_v18 = vcombine.low %v2694_v6, %v2701_v22  ;;  %v2449_v0 = vrot.slane %v3528_v47, %v4164_v48 }
  0xdf   : > { %v4472_v56 = vpop.permute.xlu0 %689  ;;  %v1362_v31 = vrot.slane %v3519_v10, 1  ;;  %v2456_v7 = vrot.slane %v2440_v39, %v4164_v48  ;;  %v208_v39 = vld [vmem:[%s3887_s19 + $0x24] sm:$0x7] }
  0xe0   : > { %v4476_v59 = vpop.permute.xlu1 %787 }
  0xe1   : > { %1143 = vrot.lane.b32.xlu0 %v3497_v12, %s3834_s22  ;;  %v1241_v12 = vrot.slane %v1239_v15, 1  ;;  %v2471_v52 = vcombine.low %v2449_v0, %v2456_v7 }
  0xe2   : > { %781 = vrot.lane.b32.xlu1 %v3449_v14, %s3832_s20 }
  0xe3   : > { %v1388_v49 = vpop.permute.xlu0 %1387  ;;  %v1242_v32 = vor.u32 %v1241_v12, %v1237_v8 }
  0xe4   : > { %v4492_v63 = vsel %vm1614_vm9, %v1605_v58, %v1388_v49  ;;  %v4494_v1 = vpop.permute.xlu1 %955  ;;  %v1430_v49 = vsel %vm1397_vm2, %v3410_v40, %v4428_v57 }
  0xe5   : > { %v4498_v51 = vrot.slane %v4492_v63, %v4164_v48  ;;  %1311 = vrot.lane.b32.xlu0 %v1284_v43, %s3838_s26  ;;  %v2089_v44 = vcombine.high %v4492_v63, %v4492_v63  ;;  %v1462_v53 = vsel %vm1440_vm3, %v1430_v49, %v4472_v56 }
  0xe6   : > { %949 = vrot.lane.b32.xlu1 %v892_v60, %s3837_s25  ;;  %v2724_v60 = vrot.slane %v2716_v18, %v4164_v48  ;;  %v1491_v56 = vsel %vm1469_vm4, %v1462_v53, %v4476_v59 }
  0xe7   : > { %v4507_v17 = vrot.slane %v4498_v51, %v4164_v48  ;;  %v1124_v61 = vpop.permute.xlu0 %1123  ;;  %v2104_v55 = vcombine.high %v4498_v51, %v4498_v51  ;;  %v2103_v63 = vrot.slane %v2089_v44, %v4164_v48  ;;  %v1799_v51 = vcombine.high %v1783_v11, %v1783_v11 }
  0xe8   : > { %v4511_v23 = vpop.permute.xlu1 %1039  ;;  %v1564_v37 = vsel %vm1556_vm7, %v1535_v21, %v1124_v61  ;;  %v1520_v19 = vsel %vm1498_vm5, %v1491_v56, %v4494_v1 }
  0xe9   : > { %1395 = vrot.lane.b32.xlu0 %v1368_v25, %s3839_s27  ;;  %v2687_v26 = vcombine.low %v2087_v41, %v4507_v17  ;;  %v2126_v4 = vrot.slane %v2104_v55, %v4164_v48  ;;  %v2105_v16 = vcombine.high %v2103_v63, %v2103_v63  ;;  %v2119_v61 = vrot.slane %v2103_v63, %v4164_v48 }
  0xea   : > { %1131 = vrot.lane.b32.xlu1 %v3491_v5, %s3834_s22  ;;  %v1549_v41 = vsel %vm1527_vm6, %v1520_v19, %v4511_v23  ;;  %v2134_v8 = vcombine.high %v4507_v17, %v4507_v17  ;;  %v2479_v23 = vrot.slane %v2471_v52, %v4164_v48 }
  0xeb   : > { %v1292_v14 = vpop.permute.xlu0 %1291  ;;  %v2715_v30 = vrot.slane %v2687_v26, %v4164_v48  ;;  %v2136_v22 = vcombine.high %v2126_v4, %v2126_v4  ;;  %v2133_v1 = vrot.slane %v2105_v16, %v4164_v48 }
  0xec   : > { %v4524_v3 = vpop.permute.xlu1 %593  ;;  %v1593_v43 = vsel %vm1585_vm8, %v1564_v37, %v1292_v14  ;;  %v2135_v14 = vcombine.high %v2119_v61, %v2119_v61  ;;  %v2733_v17 = vcombine.low %v2126_v4, %v2134_v8 }
  0xed   : > { %1033 = vrot.lane.b32.xlu0 %v1012_v13, %s3835_s23  ;;  %v2717_v35 = vcombine.low %v2708_v27, %v2715_v30  ;;  %v2734_v27 = vcombine.low %v2136_v22, %v2119_v61 }
  0xee   : > { %1383 = vrot.lane.b32.xlu1 %v1362_v31, %s3839_s27 }
  0xef   : > { %v1376_v38 = vpop.permute.xlu0 %1375  ;;  %v2731_v54 = vrot.slane %v2717_v35, %v4164_v48  ;;  %v2735_v35 = vcombine.low %v2133_v1, %v2135_v14  ;;  %v2750_v37 = vrot.slane %v2734_v27, %v4164_v48 }
  0xf0   : > { %v4537_v45 = vsel %vm1614_vm9, %v1593_v43, %v1376_v38  ;;  %v4539_v29 = vpop.permute.xlu1 %677  ;;  %v2743_v43 = vrot.slane %v2733_v17, %v4164_v48 }
  0xf1   : > { %v1808_v36 = vrot.slane %v4537_v45, %v4164_v48  ;;  %1299 = vrot.lane.b32.xlu0 %v1242_v32, %s3838_s26  ;;  %v2732_v58 = vcombine.low %v2724_v60, %v2731_v54  ;;  %v3802_v60 = vld [vmem:[%s3887_s19 + $0x20] sm:$0xf]  ;;  %v2757_v47 = vrot.slane %v2735_v35, %v4164_v48 }
  0xf2   : > { %v3404_v54 = vcombine.low %v3802_v60, %v208_v39  ;;  %v2765_v49 = vcombine.low %v2743_v43, %v2750_v37  ;;  %v210_v60 = vld [vmem:[%s3887_s19 + $0x2c] sm:$0x7] }
  0xf3   : > { %v1816_v20 = vcombine.high %v1808_v36, %v1808_v36  ;;  %v1824_v62 = vrot.slane %v1808_v36, %v4164_v48  ;;  %v1138_v42 = vpop.permute.xlu0 %1137  ;;  %3604 = vmatmul.mubr.msk.bf16.vlgmr.msra.gmra.mxu1 %vm2959_vm10, %v2732_v58  ;;  %v1801_v36 = vcombine.high %v4537_v45, %v4537_v45 }
  0xf4   : > { %v4558_v25 = vpop.permute.xlu1 %775  ;;  %3607 = vmatprep.mubr.msk.bf16.mxu1 %vm3841_vm1, %v3840_v28  ;;  %v1578_v13 = vsel %vm1556_vm7, %v1549_v41, %v1138_v42  ;;  %v1412_v7 = vsel %vm1397_vm2, %v3404_v54, %v4524_v3  ;;  %v2773_v63 = vrot.slane %v2765_v49, %v4164_v48  ;;  %v222_v3 = vld [vmem:[%s3887_s19 + $0x5c] sm:$0x7] }
  0xf5   : > { %v4562_v50 = vrot.slane %v1816_v20, %v4164_v48  ;;  %v1846_v57 = vcombine.high %v1824_v62, %v1824_v62  ;;  %v2441_v15 = vcombine.low %v1799_v51, %v1824_v62  ;;  %v1815_v53 = vrot.slane %v1801_v36, %v4164_v48 }
  0xf7   : > { %v2442_v5 = vcombine.low %v4562_v50, %v1846_v57  ;;  %v1306_v10 = vpop.permute.xlu0 %1305  ;;  %v2463_v24 = vrot.slane %v2441_v15, %v4164_v48  ;;  %v1450_v57 = vsel %vm1440_vm3, %v1412_v7, %v4539_v29  ;;  %v1817_v15 = vcombine.high %v1815_v53, %v1815_v53 }
  0xf8   : > { %v4573_v6 = vpop.permute.xlu1 %607  ;;  %v1607_v2 = vsel %vm1585_vm8, %v1578_v13, %v1306_v10  ;;  %v1831_v56 = vrot.slane %v1815_v53, %v4164_v48  ;;  %v1848_v29 = vcombine.high %v4562_v50, %v4562_v50 }
  0xf9   : > { %v2470_v59 = vrot.slane %v2442_v5, %v4164_v48  ;;  %v1479_v5 = vsel %vm1469_vm4, %v1450_v57, %v4558_v25  ;;  %v1845_v25 = vrot.slane %v1817_v15, %v4164_v48 }
  0xfa   : > { %v1847_v41 = vcombine.high %v1831_v56, %v1831_v56 }
  0xfb   : > { %v2472_v12 = vcombine.low %v2463_v24, %v2470_v59  ;;  %v1390_v26 = vpop.permute.xlu0 %1389  ;;  %v3803_v24 = vld [vmem:[%s3887_s19 + $0x58] sm:$0xf] }
  0xfc   : > { %v1636_v31 = vsel %vm1614_vm9, %v1607_v2, %v1390_v26  ;;  %v4585_v33 = vpop.permute.xlu1 %691  ;;  %v3411_v59 = vcombine.low %v3803_v24, %v222_v3  ;;  %v2489_v50 = vcombine.low %v1845_v25, %v1847_v41 }
  0xfd   : > { %v2144_v18 = vrot.slane %v1636_v31, %v4164_v48  ;;  %v2486_v34 = vrot.slane %v2472_v12, %v4164_v48  ;;  %v2137_v61 = vcombine.high %v1636_v31, %v1636_v31  ;;  %v2488_v12 = vcombine.low %v1848_v29, %v1831_v56 }
  0xfe   : > { %v1433_v31 = vsel %vm1397_vm2, %v3411_v59, %v4573_v6 }
  0xff   : > { %v2152_v30 = vcombine.high %v2144_v18, %v2144_v18  ;;  %v944_v11 = vpop.permute.xlu0 %943  ;;  %v2487_v21 = vcombine.low %v2479_v23, %v2486_v34  ;;  %v4595_v9 = vrot.slane %v2144_v18, %v4164_v48  ;;  %v2151_v2 = vrot.slane %v2137_v61, %v4164_v48 }
 0x100   : > { %v4590_v32 = vpop.permute.xlu1 %789  ;;  %v1508_v10 = vsel %vm1498_vm5, %v1479_v5, %v944_v11  ;;  %v2498_v18 = vrot.slane %v2488_v12, %v4164_v48  ;;  %v1464_v17 = vsel %vm1440_vm3, %v1433_v31, %v4585_v33  ;;  %v2505_v11 = vrot.slane %v2489_v50, %v4164_v48 }
 0x101   : > { %v4598_v40 = vrot.slane %v2152_v30, %v4164_v48  ;;  %3584 = vmatmul.mubr.msk.bf16.gmra.mxu0 %vm2959_vm10, %v2487_v21  ;;  %v2153_v34 = vcombine.high %v2151_v2, %v2151_v2  ;;  %v1493_v21 = vsel %vm1469_vm4, %v1464_v17, %v4590_v32 }
 0x102   : > { %3587 = vmatprep.mubr.msk.bf16.mxu0 %vm3841_vm1, %v3840_v28 }
 0x103   : > { %v2736_v38 = vcombine.low %v4595_v9, %v4598_v40  ;;  %v1028_v44 = vpop.permute.xlu0 %1027  ;;  %v3532_v56 = vcombine.high %v4595_v9, %v4598_v40 }
 0x104   : > { %v4607_v55 = vpop.permute.xlu1 %595  ;;  %v1537_v52 = vsel %vm1527_vm6, %v1508_v10, %v1028_v44  ;;  %v2181_v44 = vrot.slane %v2153_v34, %v4164_v48 }
 0x105   : > { %v2764_v58 = vrot.slane %v2736_v38, %v4164_v48  ;;  %v2792_v40 = vrot.slane %v3532_v56, %v4164_v48 }
 0x107   : > { %v2766_v20 = vcombine.low %v2757_v47, %v2764_v58  ;;  %v1126_v62 = vpop.permute.xlu0 %1125  ;;  %v2520_v47 = vcombine.low %v2498_v18, %v2505_v11  ;;  %v2167_v58 = vrot.slane %v2151_v2, %v4164_v48 }
 0x108   : > { %v1294_v42 = vpop.permute.xlu1 %1293  ;;  %v1566_v19 = vsel %vm1556_vm7, %v1537_v52, %v1126_v62 }
 0x109   : > { %v2780_v51 = vrot.slane %v2766_v20, %v4164_v48  ;;  %v1595_v13 = vsel %vm1585_vm8, %v1566_v19, %v1294_v42  ;;  %v3804_v20 = vld [vmem:[%s3887_s19 + $0x28] sm:$0xf]  ;;  %v2183_v25 = vcombine.high %v2167_v58, %v2167_v58 }
 0x10a   : > { %v3405_v62 = vcombine.low %v3804_v20, %v210_v60 }
 0x10b   : > { %v958_v4 = vpop.permute.xlu0 %957  ;;  %v2781_v45 = vcombine.low %v2773_v63, %v2780_v51  ;;  %v2783_v63 = vcombine.low %v2167_v58, %v2181_v44 }
 0x10c   : > { %v1042_v0 = vpop.permute.xlu1 %1041  ;;  %v1522_v37 = vsel %vm1498_vm5, %v1493_v21, %v958_v4  ;;  %v1415_v5 = vsel %vm1397_vm2, %v3405_v62, %v4607_v55 }
 0x10d   : > { %3608 = vmatmul.mubr.msk.bf16.gmra.mxu1 %vm2959_vm10, %v2781_v45  ;;  %v1551_v54 = vsel %vm1527_vm6, %v1522_v37, %v1042_v0  ;;  %v2528_v0 = vrot.slane %v2520_v47, %v4164_v48  ;;  %v2799_v61 = vrot.slane %v2783_v63, %v4164_v48 }
 0x10e   : > { %3611 = vmatprep.mubr.msk.bf16.mxu1 %vm3841_vm1, %v3840_v28 }
 0x10f   : > { %v680_v16 = vpop.permute.xlu0 %679  ;;  %v2814_v12 = vcombine.low %v2792_v40, %v2799_v61 }
 0x110   : > { %v4632_v22 = vpop.permute.xlu1 %777  ;;  %v1452_v19 = vsel %vm1440_vm3, %v1415_v5, %v680_v16 }
 0x111   : > { %v1481_v16 = vsel %vm1469_vm4, %v1452_v19, %v4632_v22  ;;  %v2822_v21 = vrot.slane %v2814_v12, %v4164_v48 }
 0x113   : > { %v1378_v8 = vpop.permute.xlu0 %1377 }
 0x114   : > { %v1624_v26 = vsel %vm1614_vm9, %v1595_v13, %v1378_v8  ;;  %v946_v1 = vpop.permute.xlu1 %945 }
 0x115   : > { %v1856_v23 = vrot.slane %v1624_v26, %v4164_v48  ;;  %v1849_v45 = vcombine.high %v1624_v26, %v1624_v26  ;;  %v1510_v2 = vsel %vm1498_vm5, %v1481_v16, %v946_v1 }
 0x117   : > { %v1864_v14 = vcombine.high %v1856_v23, %v1856_v23  ;;  %v1140_v27 = vpop.permute.xlu0 %1139  ;;  %v1872_v6 = vrot.slane %v1856_v23, %v4164_v48  ;;  %v1863_v24 = vrot.slane %v1849_v45, %v4164_v48 }
 0x118   : > { %v1030_v30 = vpop.permute.xlu1 %1029  ;;  %v1580_v49 = vsel %vm1556_vm7, %v1551_v54, %v1140_v27 }
 0x119   : > { %v1886_v35 = vrot.slane %v1864_v14, %v4164_v48  ;;  %v1865_v50 = vcombine.high %v1863_v24, %v1863_v24  ;;  %v1539_v31 = vsel %vm1527_vm6, %v1510_v2, %v1030_v30  ;;  %v1879_v17 = vrot.slane %v1863_v24, %v4164_v48  ;;  %v212_v2 = vld [vmem:[%s3887_s19 + $0x34] sm:$0x7] }
 0x11b   : > { %v2490_v39 = vcombine.low %v1872_v6, %v1886_v35  ;;  %v3529_v43 = vcombine.high %v1872_v6, %v1886_v35  ;;  %v1308_v38 = vpop.permute.xlu0 %1307  ;;  %v1893_v30 = vrot.slane %v1865_v50, %v4164_v48  ;;  %v1895_v54 = vcombine.high %v1879_v17, %v1879_v17 }
 0x11c   : > { %v4653_v33 = vpop.permute.xlu1 %609  ;;  %v1609_v7 = vsel %vm1585_vm8, %v1580_v49, %v1308_v38  ;;  %v224_v49 = vld [vmem:[%s3887_s19 + $0x64] sm:$0x7] }
 0x11d   : > { %v2512_v36 = vrot.slane %v2490_v39, %v4164_v48  ;;  %v2519_v32 = vrot.slane %v3529_v43, %v4164_v48 }
 0x11f   : > { %v2521_v42 = vcombine.low %v2512_v36, %v2519_v32  ;;  %v1392_v53 = vpop.permute.xlu0 %1391  ;;  %v2537_v32 = vcombine.low %v1879_v17, %v1893_v30 }
 0x120   : > { %v4663_v51 = vsel %vm1614_vm9, %v1609_v7, %v1392_v53  ;;  %v4665_v4 = vpop.permute.xlu1 %693 }
 0x121   : > { %v2192_v57 = vrot.slane %v4663_v51, %v4164_v48  ;;  %v2535_v15 = vrot.slane %v2521_v42, %v4164_v48  ;;  %v2185_v56 = vcombine.high %v4663_v51, %v4663_v51 }
 0x123   : > { %v2200_v3 = vcombine.high %v2192_v57, %v2192_v57  ;;  %v2208_v10 = vrot.slane %v2192_v57, %v4164_v48  ;;  %v1128_v52 = vpop.permute.xlu0 %1127  ;;  %v2536_v29 = vcombine.low %v2528_v0, %v2535_v15  ;;  %v2547_v57 = vrot.slane %v2537_v32, %v4164_v48  ;;  %v3805_v0 = vld [vmem:[%s3887_s19 + $0x60] sm:$0xf] }
 0x124   : > { %v4678_v41 = vpop.permute.xlu1 %791  ;;  %v1568_v27 = vsel %vm1556_vm7, %v1539_v31, %v1128_v52  ;;  %v3412_v15 = vcombine.low %v3805_v0, %v224_v49 }
 0x125   : > { %v4682_v59 = vrot.slane %v2200_v3, %v4164_v48  ;;  %v2230_v9 = vcombine.high %v2208_v10, %v2208_v10  ;;  %3588 = vmatmul.mubr.msk.bf16.gmra.mxu0 %vm2959_vm10, %v2536_v29  ;;  %v2784_v55 = vcombine.low %v2183_v25, %v2208_v10  ;;  %v2199_v25 = vrot.slane %v2185_v56, %v4164_v48  ;;  %v3807_v56 = vld [vmem:[%s3887_s19 + $0x68] sm:$0xf] }
 0x126   : > { %3591 = vmatprep.mubr.msk.bf16.mxu0 %vm3841_vm1, %v3840_v28  ;;  %v1436_v19 = vsel %vm1397_vm2, %v3412_v15, %v4653_v33 }
 0x127   : > { %v2785_v13 = vcombine.low %v4682_v59, %v2230_v9  ;;  %v1296_v8 = vpop.permute.xlu0 %1295  ;;  %v2806_v23 = vrot.slane %v2784_v55, %v4164_v48  ;;  %v1466_v55 = vsel %vm1440_vm3, %v1436_v19, %v4665_v4  ;;  %v2232_v4 = vcombine.high %v4682_v59, %v4682_v59 }
 0x128   : > { %v4692_v26 = vpop.permute.xlu1 %597  ;;  %v1597_v22 = vsel %vm1585_vm8, %v1568_v27, %v1296_v8  ;;  %v2215_v8 = vrot.slane %v2199_v25, %v4164_v48  ;;  %v1495_v12 = vsel %vm1469_vm4, %v1466_v55, %v4678_v41 }
 0x129   : > { %v2813_v14 = vrot.slane %v2785_v13, %v4164_v48  ;;  %v2201_v13 = vcombine.high %v2199_v25, %v2199_v25 }
 0x12b   : > { %v2815_v18 = vcombine.low %v2806_v23, %v2813_v14  ;;  %v1380_v34 = vpop.permute.xlu0 %1379  ;;  %v2229_v41 = vrot.slane %v2201_v13, %v4164_v48  ;;  %v214_v13 = vld [vmem:[%s3887_s19 + $0x3c] sm:$0x7] }
 0x12c   : > { %v1626_v11 = vsel %vm1614_vm9, %v1597_v22, %v1380_v34  ;;  %v4701_v1 = vpop.permute.xlu1 %681  ;;  %v3806_v22 = vld [vmem:[%s3887_s19 + $0x30] sm:$0xf] }
 0x12d   : > { %v1897_v6 = vcombine.high %v1626_v11, %v1626_v11  ;;  %v1904_v35 = vrot.slane %v1626_v11, %v4164_v48  ;;  %v2829_v37 = vrot.slane %v2815_v18, %v4164_v48  ;;  %v2231_v18 = vcombine.high %v2215_v8, %v2215_v8 }
 0x12e   : > { %v3406_v34 = vcombine.low %v3806_v22, %v212_v2 }
 0x12f   : > { %v4708_v39 = vrot.slane %v1897_v6, %v4164_v48  ;;  %v1912_v43 = vcombine.high %v1904_v35, %v1904_v35  ;;  %v1920_v38 = vrot.slane %v1904_v35, %v4164_v48  ;;  %v960_v44 = vpop.permute.xlu0 %959  ;;  %v2830_v60 = vcombine.low %v2822_v21, %v2829_v37 }
 0x130   : > { %v4711_v36 = vpop.permute.xlu1 %779  ;;  %v1524_v50 = vsel %vm1498_vm5, %v1495_v12, %v960_v44  ;;  %v2831_v21 = vcombine.low %v2232_v4, %v2215_v8  ;;  %v2832_v6 = vcombine.low %v2229_v41, %v2231_v18  ;;  %v1418_v35 = vsel %vm1397_vm2, %v3406_v34, %v4692_v26 }
 0x131   : > { %v1934_v47 = vrot.slane %v1912_v43, %v4164_v48  ;;  %v1942_v58 = vcombine.high %v1920_v38, %v1920_v38  ;;  %3612 = vmatmul.mubr.msk.bf16.gmra.mxu1 %vm2959_vm10, %v2830_v60  ;;  %v2538_v20 = vcombine.low %v1895_v54, %v1920_v38  ;;  %v4720_v62 = vrot.slane %v4708_v39, %v4164_v48 }
 0x132   : > { %3615 = vmatprep.mubr.msk.bf16.mxu1 %vm3841_vm1, %v3840_v28  ;;  %v2841_v44 = vrot.slane %v2831_v21, %v4164_v48  ;;  %v1454_v60 = vsel %vm1440_vm3, %v1418_v35, %v4701_v1  ;;  %v2848_v32 = vrot.slane %v2832_v6, %v4164_v48 }
 0x133   : > { %v1944_v42 = vcombine.high %v1934_v47, %v1934_v47  ;;  %v2539_v7 = vcombine.low %v1934_v47, %v1942_v58  ;;  %v1044_v53 = vpop.permute.xlu0 %1043  ;;  %v2554_v63 = vrot.slane %v2538_v20, %v4164_v48  ;;  %v1483_v47 = vsel %vm1469_vm4, %v1454_v60, %v4711_v36  ;;  %v226_v20 = vld [vmem:[%s3887_s19 + $0x6c] sm:$0x7] }
 0x134   : > { %v4723_v45 = vpop.permute.xlu1 %611  ;;  %v1553_v31 = vsel %vm1527_vm6, %v1524_v50, %v1044_v53  ;;  %v2863_v15 = vcombine.low %v2841_v44, %v2848_v32  ;;  %v1913_v36 = vcombine.high %v4708_v39, %v4708_v39  ;;  %v1943_v55 = vcombine.high %v4720_v62, %v4720_v62 }
 0x135   : > { %v2540_v5 = vcombine.low %v1944_v42, %v4720_v62  ;;  %v2561_v3 = vrot.slane %v2539_v7, %v4164_v48  ;;  %v2569_v52 = vcombine.low %v2547_v57, %v2554_v63 }
 0x137   : > { %v2568_v10 = vrot.slane %v2540_v5, %v4164_v48  ;;  %v1142_v29 = vpop.permute.xlu0 %1141  ;;  %v2577_v40 = vrot.slane %v2569_v52, %v4164_v48  ;;  %v3413_v5 = vcombine.low %v3807_v56, %v226_v20 }
 0x138   : > { %v1310_v61 = vpop.permute.xlu1 %1309  ;;  %v1582_v14 = vsel %vm1556_vm7, %v1553_v31, %v1142_v29 }
 0x139   : > { %v2570_v24 = vcombine.low %v2561_v3, %v2568_v10  ;;  %v1611_v17 = vsel %vm1585_vm8, %v1582_v14, %v1310_v61  ;;  %v3407_v14 = vcombine.low %v4353_v46, %v214_v13 }
 0x13b   : > { %v948_v9 = vpop.permute.xlu0 %947  ;;  %v2584_v51 = vrot.slane %v2570_v24, %v4164_v48 }
 0x13c   : > { %v1032_v16 = vpop.permute.xlu1 %1031  ;;  %v1512_v49 = vsel %vm1498_vm5, %v1483_v47, %v948_v9 }
 0x13d   : > { %v2585_v33 = vcombine.low %v2577_v40, %v2584_v51  ;;  %v1541_v1 = vsel %vm1527_vm6, %v1512_v49, %v1032_v16  ;;  %v2871_v40 = vrot.slane %v2863_v15, %v4164_v48  ;;  %v1941_v51 = vrot.slane %v1913_v36, %v4164_v48 }
 0x13e   : > { %v1439_v16 = vsel %vm1397_vm2, %v3413_v5, %v4723_v45 }
 0x13f   : > { %v696_v23 = vpop.permute.xlu0 %695  ;;  %3592 = vmatmul.mubr.msk.bf16.gmra.mxu0 %vm2959_vm10, %v2585_v33  ;;  %v2586_v45 = vcombine.low %v1941_v51, %v1943_v55 }
 0x140   : > { %v4749_v27 = vpop.permute.xlu1 %793  ;;  %3595 = vmatprep.mubr.msk.bf16.mxu0 %vm3841_vm1, %v3840_v28  ;;  %v1468_v8 = vsel %vm1440_vm3, %v1439_v16, %v696_v23 }
 0x141   : > { %v1497_v23 = vsel %vm1469_vm4, %v1468_v8, %v4749_v27 }
 0x143   : > { %v1394_v11 = vpop.permute.xlu0 %1393 }
 0x144   : > { %v1640_v30 = vsel %vm1614_vm9, %v1611_v17, %v1394_v11  ;;  %v4757_v59 = vpop.permute.xlu1 %961 }
 0x145   : > { %v2240_v37 = vrot.slane %v1640_v30, %v4164_v48  ;;  %v2233_v61 = vcombine.high %v1640_v30, %v1640_v30  ;;  %v1526_v30 = vsel %vm1498_vm5, %v1497_v23, %v4757_v59 }
 0x147   : > { %v2248_v43 = vcombine.high %v2240_v37, %v2240_v37  ;;  %v1130_v38 = vpop.permute.xlu0 %1129  ;;  %v2256_v58 = vrot.slane %v2240_v37, %v4164_v48  ;;  %v2247_v31 = vrot.slane %v2233_v61, %v4164_v48 }
 0x148   : > { %v1046_v54 = vpop.permute.xlu1 %1045  ;;  %v1570_v3 = vsel %vm1556_vm7, %v1541_v1, %v1130_v38  ;;  %v2596_v38 = vrot.slane %v2586_v45, %v4164_v48 }
 0x149   : > { %v2270_v26 = vrot.slane %v2248_v43, %v4164_v48  ;;  %v2249_v21 = vcombine.high %v2247_v31, %v2247_v31  ;;  %v1555_v35 = vsel %vm1527_vm6, %v1526_v30, %v1046_v54  ;;  %v2263_v60 = vrot.slane %v2247_v31, %v4164_v48 }
 0x14b   : > { %v2833_v42 = vcombine.low %v2256_v58, %v2270_v26  ;;  %v3533_v7 = vcombine.high %v2256_v58, %v2270_v26  ;;  %v1298_v53 = vpop.permute.xlu0 %1297  ;;  %v2277_v54 = vrot.slane %v2249_v21, %v4164_v48 }
 0x14c   : > { %v600_v63 = vpop.permute.xlu1 %599  ;;  %v1599_v52 = vsel %vm1585_vm8, %v1570_v3, %v1298_v53  ;;  %v2279_v3 = vcombine.high %v2263_v60, %v2263_v60 }
 0x14d   : > { %v2855_v57 = vrot.slane %v2833_v42, %v4164_v48  ;;  %v2862_v0 = vrot.slane %v3533_v7, %v4164_v48  ;;  %v1421_v27 = vsel %vm1397_vm2, %v3407_v14, %v600_v63 }
 0x14f   : > { %v2864_v10 = vcombine.low %v2855_v57, %v2862_v0  ;;  %v1382_v29 = vpop.permute.xlu0 %1381 }
 0x150   : > { %v1628_v19 = vsel %vm1614_vm9, %v1599_v52, %v1382_v29  ;;  %v684_v25 = vpop.permute.xlu1 %683  ;;  %v2880_v29 = vcombine.low %v2263_v60, %v2277_v54 }
 0x151   : > { %v1945_v24 = vcombine.high %v1628_v19, %v1628_v19  ;;  %v1952_v9 = vrot.slane %v1628_v19, %v4164_v48  ;;  %v2878_v39 = vrot.slane %v2864_v10, %v4164_v48  ;;  %v1456_v49 = vsel %vm1440_vm3, %v1421_v27, %v684_v25 }
 0x153   : > { %v1959_v12 = vrot.slane %v1945_v24, %v4164_v48  ;;  %v1960_v33 = vcombine.high %v1952_v9, %v1952_v9  ;;  %v1144_v2 = vpop.permute.xlu0 %1143  ;;  %v2879_v50 = vcombine.low %v2871_v40, %v2878_v39  ;;  %v1968_v18 = vrot.slane %v1952_v9, %v4164_v48 }
 0x154   : > { %v782_v4 = vpop.permute.xlu1 %781  ;;  %v1584_v44 = vsel %vm1556_vm7, %v1555_v35, %v1144_v2 }
 0x155   : > { %v1961_v41 = vcombine.high %v1959_v12, %v1959_v12  ;;  %v1982_v62 = vrot.slane %v1960_v33, %v4164_v48  ;;  %3616 = vmatmul.mubr.msk.bf16.gmra.mxu1 %vm2959_vm10, %v2879_v50  ;;  %v4802_v22 = vrot.slane %v1959_v12, %v4164_v48  ;;  %v1485_v53 = vsel %vm1469_vm4, %v1456_v49, %v782_v4 }
 0x156   : > { %3619 = vmatprep.mubr.msk.bf16.mxu1 %vm3841_vm1, %v3840_v28  ;;  %v2890_v12 = vrot.slane %v2880_v29, %v4164_v48 }
 0x157   : > { %v1989_v34 = vrot.slane %v1961_v41, %v4164_v48  ;;  %v2587_v46 = vcombine.low %v1968_v18, %v1982_v62  ;;  %v3530_v17 = vcombine.high %v1968_v18, %v1982_v62  ;;  %v1312_v11 = vpop.permute.xlu0 %1311 }
 0x158   : > { %v950_v6 = vpop.permute.xlu1 %949  ;;  %v1613_v59 = vsel %vm1585_vm8, %v1584_v44, %v1312_v11 }
 0x159   : > { %v2589_v37 = vcombine.low %v4802_v22, %v1989_v34  ;;  %v2603_v43 = vrot.slane %v2587_v46, %v4164_v48  ;;  %v2610_v32 = vrot.slane %v3530_v17, %v4164_v48  ;;  %v1514_v57 = vsel %vm1498_vm5, %v1485_v53, %v950_v6 }
 0x15a   : > { %v1991_v17 = vcombine.high %v4802_v22, %v4802_v22 }
 0x15b   : > { %v2617_v47 = vrot.slane %v2589_v37, %v4164_v48  ;;  %v1396_v58 = vpop.permute.xlu0 %1395  ;;  %v2618_v26 = vcombine.low %v2596_v38, %v2603_v43 }
 0x15c   : > { %v1642_v20 = vsel %vm1614_vm9, %v1613_v59, %v1396_v58  ;;  %v1132_v42 = vpop.permute.xlu1 %1131 }
 0x15d   : > { %v2619_v7 = vcombine.low %v2610_v32, %v2617_v47  ;;  %v2281_v63 = vcombine.high %v1642_v20, %v1642_v20  ;;  %v2288_v1 = vrot.slane %v1642_v20, %v4164_v48  ;;  %v2626_v52 = vrot.slane %v2618_v26, %v4164_v48 }
 0x15f   : > { %v2295_v0 = vrot.slane %v2281_v63, %v4164_v48  ;;  %v2296_v15 = vcombine.high %v2288_v1, %v2288_v1  ;;  %v2304_v36 = vrot.slane %v2288_v1, %v4164_v48  ;;  %v1034_v56 = vpop.permute.xlu0 %1033  ;;  %v2633_v5 = vrot.slane %v2619_v7, %v4164_v48 }
 0x160   : > { %v1543_v10 = vsel %vm1527_vm6, %v1514_v57, %v1034_v56  ;;  %v1384_v9 = vpop.permute.xlu1 %1383 }
 0x161   : > { %v2318_v61 = vrot.slane %v2296_v15, %v4164_v48  ;;  %v2326_v19 = vcombine.high %v2304_v36, %v2304_v36  ;;  %v2881_v25 = vcombine.low %v2279_v3, %v2304_v36  ;;  %v2634_v24 = vcombine.low %v2626_v52, %v2633_v5  ;;  %v4868_v15 = vld [vmem:[%s4936_s2] ss:$0 sm:$0xff] }
 0x162   : > { %v2311_v40 = vrot.slane %v2295_v0, %v4164_v48  ;;  %v1572_v55 = vsel %vm1556_vm7, %v1543_v10, %v1132_v42  ;;  %v2297_v33 = vcombine.high %v2295_v0, %v2295_v0 }
 0x163   : > { %v2328_v39 = vcombine.high %v2318_v61, %v2318_v61  ;;  %v2882_v51 = vcombine.low %v2318_v61, %v2326_v19  ;;  %v1300_v16 = vpop.permute.xlu0 %1299  ;;  %v2897_v13 = vrot.slane %v2881_v25, %v4164_v48  ;;  %3596 = vmatmul.mubr.msk.bf16.gmra.mxu0 %vm2959_vm10, %v2634_v24 }
 0x164   : > { %v1601_v8 = vsel %vm1585_vm8, %v1572_v55, %v1300_v16  ;;  %3599 = vmatprep.mubr.msk.bf16.mxu0 %vm3841_vm1, %v3840_v28  ;;  %v2325_v34 = vrot.slane %v2297_v33, %v4164_v48  ;;  %v2327_v46 = vcombine.high %v2311_v40, %v2311_v40 }
 0x165   : > { %v2883_v2 = vcombine.low %v2328_v39, %v2311_v40  ;;  %v1630_v50 = vsel %vm1614_vm9, %v1601_v8, %v1384_v9  ;;  %v2904_v14 = vrot.slane %v2882_v51, %v4164_v48  ;;  %v2912_v18 = vcombine.low %v2890_v12, %v2897_v13 }
 0x166   : > { %v1993_v31 = vcombine.high %v1630_v50, %v1630_v50  ;;  %v2000_v4 = vrot.slane %v1630_v50, %v4164_v48  ;;  %v2929_v47 = vcombine.low %v2325_v34, %v2327_v46 }
 0x167   : > { %v2911_v41 = vrot.slane %v2883_v2, %v4164_v48  ;;  %v2920_v37 = vrot.slane %v2912_v18, %v4164_v48 }
 0x168   : > { %v2007_v62 = vrot.slane %v1993_v31, %v4164_v48  ;;  %v2008_v45 = vcombine.high %v2000_v4, %v2000_v4  ;;  %v2016_v23 = vrot.slane %v2000_v4, %v4164_v48  ;;  %v2936_v7 = vrot.slane %v2929_v47, %v4164_v48 }
 0x169   : > { %v2913_v11 = vcombine.low %v2904_v14, %v2911_v41 }
 0x16a   : > { %v2009_v21 = vcombine.high %v2007_v62, %v2007_v62  ;;  %v2023_v30 = vrot.slane %v2007_v62, %v4164_v48  ;;  %v2030_v6 = vrot.slane %v2008_v45, %v4164_v48  ;;  %v2038_v35 = vcombine.high %v2016_v23, %v2016_v23 }
 0x16b   : > { %v2635_v27 = vcombine.low %v1991_v17, %v2016_v23  ;;  %v2927_v43 = vrot.slane %v2913_v11, %v4164_v48  ;;  %v2943_v57 = vrot.slane %v2936_v7, %v4164_v48 }
 0x16c   : > { %v2037_v38 = vrot.slane %v2009_v21, %v4164_v48  ;;  %v2039_v44 = vcombine.high %v2023_v30, %v2023_v30  ;;  %v2040_v60 = vcombine.high %v2030_v6, %v2030_v6  ;;  %v2636_v32 = vcombine.low %v2030_v6, %v2038_v35 }
 0x16d   : > { %v2928_v59 = vcombine.low %v2920_v37, %v2927_v43  ;;  %v2645_v54 = vrot.slane %v2635_v27, %v4164_v48 }
 0x16e   : > { %v2637_v22 = vcombine.low %v2040_v60, %v2023_v30  ;;  %v2638_v58 = vcombine.low %v2037_v38, %v2039_v44  ;;  %v2652_v26 = vrot.slane %v2636_v32, %v4164_v48 }
 0x16f   : > { %3620 = vmatmul.mubr.msk.bf16.gmra.mxu1 %vm2959_vm10, %v2928_v59 }
 0x170   : > { %v2659_v49 = vrot.slane %v2637_v22, %v4164_v48  ;;  %v2666_v20 = vrot.slane %v2638_v58, %v4164_v48  ;;  %v2667_v42 = vcombine.low %v2645_v54, %v2652_v26  ;;  %3623 = vmatprep.mubr.msk.bf16.mxu1 %vm3841_vm1, %v3840_v28 }
 0x172   : > { %v2668_v53 = vcombine.low %v2659_v49, %v2666_v20  ;;  %v2675_v63 = vrot.slane %v2667_v42, %v4164_v48 }
 0x174   : > { %v2682_v1 = vrot.slane %v2668_v53, %v4164_v48 }
 0x176   : > { %v2683_v0 = vcombine.low %v2675_v63, %v2682_v1 }
 0x177   : > { %3624 = vmatmul.mubr.msk.bf16.gmra.mxu1 %vm2959_vm10, %v2943_v57 }
 0x178   : > { %3600 = vmatmul.mubr.msk.bf16.gmra.mxu0 %vm2959_vm10, %v2683_v0 }
 0x17b   : > { %v3037_v28 = vpop.f32.mrf.mxu0 }
 0x17c   : > { %v3038_v36 = vadd.f32 %v4868_v15, %v3037_v28 }
 0x17d   : > { %v3577_v48 = vpop.f32.mrf.mxu0 }
 0x17e   : > { %v3139_v56 = vmax.f32 %v3038_v36, 0.0 }
 0x17f   : > { %v3040_v5 = vpop.f32.mrf.mxu0 }
 0x180   : > { %3164 = vst [vmem:[%s4874_s16] sm:$0xff] %v3139_v56  ;;  %v3041_v3 = vadd.f32 %v4868_v15, %v3040_v5 }
 0x181   : > { %v3578_v10 = vpop.f32.mrf.mxu0 }
 0x182   : > { %v3140_v52 = vmax.f32 %v3041_v3, 0.0 }
 0x184   : > { %3165 = vst [vmem:[%s4874_s16 + $0x8] sm:$0xff] %v3140_v52 }
 0x196   : > { %v3045_v29 = vpop.f32.mrf.mxu0 }
 0x197   : > { %v3046_v61 = vadd.f32 %v4868_v15, %v3045_v29 }
 0x198   : > { %v3581_v19 = vpop.f32.mrf.mxu0 }
 0x199   : > { %v3141_v25 = vmax.f32 %v3046_v61, 0.0 }
 0x19a   : > { %v3048_v24 = vpop.f32.mrf.mxu0 }
 0x19b   : > { %3166 = vst [vmem:[%s4874_s16 + $0x10] sm:$0xff] %v3141_v25  ;;  %v3049_v9 = vadd.f32 %v4868_v15, %v3048_v24 }
 0x19c   : > { %v3582_v40 = vpop.f32.mrf.mxu0 }
 0x19d   : > { %v3142_v39 = vmax.f32 %v3049_v9, 0.0 }
 0x19f   : > { %3167 = vst [vmem:[%s4874_s16 + $0x18] sm:$0xff] %v3142_v39 }
 0x1b3   : > { %v3093_v51 = vpop.f32.mrf.mxu1 }
 0x1b4   : > { %v3094_v55 = vadd.f32 %v4868_v15, %v3093_v51 }
 0x1b5   : > { %v3605_v16 = vpop.f32.mrf.mxu1 }
 0x1b6   : > { %v3153_v13 = vmax.f32 %v3094_v55, 0.0 }
 0x1b7   : > { %v3096_v8 = vpop.f32.mrf.mxu1 }
 0x1b8   : > { %3178 = vst [vmem:[%s4874_s16 + $0x70] sm:$0xff] %v3153_v13  ;;  %v3097_v12 = vadd.f32 %v4868_v15, %v3096_v8 }
 0x1b9   : > { %v3606_v33 = vpop.f32.mrf.mxu1 }
 0x1ba   : > { %v3154_v2 = vmax.f32 %v3097_v12, 0.0 }
 0x1bc   : > { %3179 = vst [vmem:[%s4874_s16 + $0x78] sm:$0xff] %v3154_v2 }
 0x1c1   : > { %v3053_v50 = vpop.f32.mrf.mxu0 }
 0x1c2   : > { %v3054_v31 = vadd.f32 %v4868_v15, %v3053_v50 }
 0x1c3   : > { %v3585_v4 = vpop.f32.mrf.mxu0 }
 0x1c4   : > { %v3143_v14 = vmax.f32 %v3054_v31, 0.0 }
 0x1c5   : > { %v3056_v41 = vpop.f32.mrf.mxu0 }
 0x1c6   : > { %3168 = vst [vmem:[%s4874_s16 + $0x20] sm:$0xff] %v3143_v14  ;;  %v3057_v18 = vadd.f32 %v4868_v15, %v3056_v41 }
 0x1c7   : > { %v3586_v62 = vpop.f32.mrf.mxu0 }
 0x1c8   : > { %v3144_v45 = vmax.f32 %v3057_v18, 0.0 }
 0x1ca   : > { %3169 = vst [vmem:[%s4874_s16 + $0x28] sm:$0xff] %v3144_v45 }
 0x1cd   : > { %v3101_v23 = vpop.f32.mrf.mxu1 }
 0x1ce   : > { %v3102_v34 = vadd.f32 %v4868_v15, %v3101_v23 }
 0x1cf   : > { %v3609_v46 = vpop.f32.mrf.mxu1 }
 0x1d0   : > { %v3155_v17 = vmax.f32 %v3102_v34, 0.0 }
 0x1d1   : > { %v3104_v11 = vpop.f32.mrf.mxu1 }
 0x1d2   : > { %3180 = vst [vmem:[%s4874_s16 + $0x80] sm:$0xff] %v3155_v17  ;;  %v3105_v21 = vadd.f32 %v4868_v15, %v3104_v11 }
 0x1d3   : > { %v3610_v30 = vpop.f32.mrf.mxu1 }
 0x1d4   : > { %v3156_v6 = vmax.f32 %v3105_v21, 0.0 }
 0x1d6   : > { %3181 = vst [vmem:[%s4874_s16 + $0x88] sm:$0xff] %v3156_v6 }
 0x1e5   : > { %v3061_v35 = vpop.f32.mrf.mxu0 }
 0x1e6   : > { %v3062_v27 = vadd.f32 %v4868_v15, %v3061_v35 }
 0x1e7   : > { %v3589_v37 = vpop.f32.mrf.mxu0 }
 0x1e8   : > { %v3145_v43 = vmax.f32 %v3062_v27, 0.0 }
 0x1e9   : > { %v3064_v38 = vpop.f32.mrf.mxu0 }
 0x1ea   : > { %3170 = vst [vmem:[%s4874_s16 + $0x30] sm:$0xff] %v3145_v43  ;;  %v3065_v44 = vadd.f32 %v4868_v15, %v3064_v38 }
 0x1eb   : > { %v3590_v60 = vpop.f32.mrf.mxu0 }
 0x1ec   : > { %v3146_v32 = vmax.f32 %v3065_v44, 0.0 }
 0x1ee   : > { %3171 = vst [vmem:[%s4874_s16 + $0x38] sm:$0xff] %v3146_v32 }
 0x1f1   : > { %v3109_v47 = vpop.f32.mrf.mxu1 }
 0x1f2   : > { %v3110_v59 = vadd.f32 %v4868_v15, %v3109_v47 }
 0x1f3   : > { %v3613_v22 = vpop.f32.mrf.mxu1 }
 0x1f4   : > { %v3157_v58 = vmax.f32 %v3110_v59, 0.0 }
 0x1f5   : > { %v3112_v54 = vpop.f32.mrf.mxu1 }
 0x1f6   : > { %3182 = vst [vmem:[%s4874_s16 + $0x90] sm:$0xff] %v3157_v58  ;;  %v3113_v26 = vadd.f32 %v4868_v15, %v3112_v54 }
 0x1f7   : > { %v3614_v49 = vpop.f32.mrf.mxu1 }
 0x1f8   : > { %v3158_v20 = vmax.f32 %v3113_v26, 0.0 }
 0x1fa   : > { %3183 = vst [vmem:[%s4874_s16 + $0x98] sm:$0xff] %v3158_v20 }
 0x1ff   : > { %v3069_v42 = vpop.f32.mrf.mxu0 }
 0x200   : > { %v3070_v7 = vadd.f32 %v4868_v15, %v3069_v42 }
 0x201   : > { %v3593_v53 = vpop.f32.mrf.mxu0 }
 0x202   : > { %v3147_v63 = vmax.f32 %v3070_v7, 0.0 }
 0x203   : > { %v3072_v1 = vpop.f32.mrf.mxu0 }
 0x204   : > { %3172 = vst [vmem:[%s4874_s16 + $0x40] sm:$0xff] %v3147_v63  ;;  %v3073_v57 = vadd.f32 %v4868_v15, %v3072_v1 }
 0x205   : > { %v3594_v0 = vpop.f32.mrf.mxu0 }
 0x206   : > { %v3148_v28 = vmax.f32 %v3073_v57, 0.0 }
 0x208   : > { %3173 = vst [vmem:[%s4874_s16 + $0x48] sm:$0xff] %v3148_v28 }
 0x215   : > { %v3117_v36 = vpop.f32.mrf.mxu1 }
 0x216   : > { %v3118_v48 = vadd.f32 %v4868_v15, %v3117_v36 }
 0x217   : > { %v3617_v56 = vpop.f32.mrf.mxu1 }
 0x218   : > { %v3159_v5 = vmax.f32 %v3118_v48, 0.0 }
 0x219   : > { %v3120_v3 = vpop.f32.mrf.mxu1 }
 0x21a   : > { %3184 = vst [vmem:[%s4874_s16 + $0xa0] sm:$0xff] %v3159_v5  ;;  %v3121_v10 = vadd.f32 %v4868_v15, %v3120_v3 }
 0x21b   : > { %v3618_v52 = vpop.f32.mrf.mxu1 }
 0x21c   : > { %v3160_v29 = vmax.f32 %v3121_v10, 0.0 }
 0x21e   : > { %3185 = vst [vmem:[%s4874_s16 + $0xa8] sm:$0xff] %v3160_v29 }
 0x223   : > { %v3077_v61 = vpop.f32.mrf.mxu0 }
 0x224   : > { %v3078_v19 = vadd.f32 %v4868_v15, %v3077_v61 }
 0x225   : > { %v3597_v25 = vpop.f32.mrf.mxu0 }
 0x226   : > { %v3149_v24 = vmax.f32 %v3078_v19, 0.0 }
 0x227   : > { %v3080_v9 = vpop.f32.mrf.mxu0 }
 0x228   : > { %3174 = vst [vmem:[%s4874_s16 + $0x50] sm:$0xff] %v3149_v24  ;;  %v3081_v40 = vadd.f32 %v4868_v15, %v3080_v9 }
 0x229   : > { %v3598_v39 = vpop.f32.mrf.mxu0 }
 0x22a   : > { %v3150_v51 = vmax.f32 %v3081_v40, 0.0 }
 0x22c   : > { %3175 = vst [vmem:[%s4874_s16 + $0x58] sm:$0xff] %v3150_v51 }
 0x22f   : > { %v3125_v55 = vpop.f32.mrf.mxu1 }
 0x230   : > { %v3126_v16 = vadd.f32 %v4868_v15, %v3125_v55 }
 0x231   : > { %v3621_v13 = vpop.f32.mrf.mxu1 }
 0x232   : > { %v3161_v8 = vmax.f32 %v3126_v16, 0.0 }
 0x233   : > { %v3128_v12 = vpop.f32.mrf.mxu1 }
 0x234   : > { %3186 = vst [vmem:[%s4874_s16 + $0xb0] sm:$0xff] %v3161_v8  ;;  %v3129_v33 = vadd.f32 %v4868_v15, %v3128_v12 }
 0x235   : > { %v3622_v2 = vpop.f32.mrf.mxu1 }
 0x236   : > { %v3162_v50 = vmax.f32 %v3129_v33, 0.0 }
 0x237   : > { %v3133_v31 = vpop.f32.mrf.mxu1 }
 0x238   : > { %3187 = vst [vmem:[%s4874_s16 + $0xb8] sm:$0xff] %v3162_v50  ;;  %v3134_v4 = vadd.f32 %v4868_v15, %v3133_v31  ;;  %v3085_v14 = vpop.f32.mrf.mxu0 }
 0x239   : > { %v3086_v41 = vadd.f32 %v4868_v15, %v3085_v14  ;;  %v3625_v18 = vpop.f32.mrf.mxu1 }
 0x23a   : > { %v3163_v62 = vmax.f32 %v3134_v4, 0.0  ;;  %v3601_v45 = vpop.f32.mrf.mxu0 }
 0x23b   : > { %v3151_v23 = vmax.f32 %v3086_v41, 0.0  ;;  %v3136_v34 = vpop.f32.mrf.mxu1 }
 0x23c   : > { %3188 = vst [vmem:[%s4874_s16 + $0xc0] sm:$0xf] %v3163_v62  ;;  %v3088_v46 = vpop.f32.mrf.mxu0 }
 0x23d   : > { %3176 = vst [vmem:[%s4874_s16 + $0x60] sm:$0xff] %v3151_v23  ;;  %v3089_v17 = vadd.f32 %v4868_v15, %v3088_v46  ;;  %v3626_v11 = vpop.f32.mrf.mxu1 }
 0x23e   : > { %v3602_v21 = vpop.f32.mrf.mxu0 }
 0x23f   : > { %v3152_v30 = vmax.f32 %v3089_v17, 0.0 }
 0x241   : > { %3177 = vst [vmem:[%s4874_s16 + $0x68] sm:$0xff] %v3152_v30 }
 0x242 PF: > { %s13_s14 = sadd.s32 1, %s3830_s14   ;;  %s4938_s12 = smov %s3826_s13 }
 0x243   : > { %p10_p5 = scmp.ge.s32.totalorder %s13_s14, 4   ;;  %s4939_s13 = smov %s4941_s15 }
 0x245   :  { %12 = sbr.rel (!%p10_p5) target bundleno = 2 (0x2), region = 65 }

</bundles_post_ra>
